<compile_context>
chip_gen: v5e
topology: v5e:2x2
jax: 0.10.0
libtpu: 0.0.40
codegen_flags: <defaults>
</compile_context>

<pallas_src>
import functools

import jax
import jax.numpy as jnp
from jax.experimental import pallas as pl
from jax.experimental.pallas import tpu as pltpu

EPS = 1e-5


def _round_up(n, m):
    return ((n + m - 1) // m) * m


def _make_kernel(lin2, lin3, out_pad):
    """Build the fused MLP kernel with static slice bounds baked in."""

    def _mlp_kernel(x_ref, w1_ref, wpack_ref, vec_ref, o_ref):
        # wpack columns: [w2 (lin2) | w3 (lin3) | w4 (out_pad)] — 128-aligned static slices.
        w2 = wpack_ref[:, 0:lin2]
        w3 = wpack_ref[:, lin2:lin2 + lin3]
        w4 = wpack_ref[:, lin2 + lin3:lin2 + lin3 + out_pad]

        def bn_relu(h, g_row, be_row):
            # Training-mode BatchNorm1d (biased batch variance), affine fused into scale/shift.
            mean = jnp.mean(h, axis=0, keepdims=True)
            var = jnp.mean(h * h, axis=0, keepdims=True) - mean * mean
            var = jnp.maximum(var, 0.0)                      # guard rsqrt against cancellation
            scale = g_row * jax.lax.rsqrt(var + EPS)         # (1, N)
            shift = be_row - mean * scale                    # (1, N)
            return jnp.maximum(h * scale + shift, 0.0)

        # Layer 1 (pre-BN bias dropped: cancelled by the mean subtraction in training-mode BN)
        h = jnp.dot(x_ref[...], w1_ref[...], preferred_element_type=jnp.float32)
        h = bn_relu(h, vec_ref[0:1, :], vec_ref[1:2, :])
        # Layer 2
        h = jnp.dot(h.astype(jnp.bfloat16), w2, preferred_element_type=jnp.float32)
        h = bn_relu(h, vec_ref[2:3, :], vec_ref[3:4, :])
        # Layer 3
        h = jnp.dot(h.astype(jnp.bfloat16), w3, preferred_element_type=jnp.float32)
        h = bn_relu(h, vec_ref[4:5, :], vec_ref[5:6, :])
        # Final Linear (no BN / ReLU), lane-padded output -> unmasked lane-dense store.
        out = jnp.dot(h.astype(jnp.bfloat16), w4, preferred_element_type=jnp.float32)
        o_ref[...] = out + vec_ref[6:7, :out_pad]

    return _mlp_kernel


def prepare_params(params):
    """One-time weight packing (pad / cast / concat). Call once, reuse every forward."""
    in_size, lin1 = params["w1"].shape
    lin2 = params["w2"].shape[1]
    lin3 = params["w3"].shape[1]
    out_size = params["w4"].shape[1]
    assert lin1 == lin2 == lin3, "vector-packing assumes equal hidden sizes"

    in_pad = _round_up(in_size, 128)                  # 784 -> 896
    out_pad = max(128, _round_up(out_size, 128))      # 10  -> 128
    assert out_pad <= lin1

    # w1 with zero-padded K rows (numerically a no-op), bf16.
    w1p = jnp.pad(params["w1"], ((0, in_pad - in_size), (0, 0))).astype(jnp.bfloat16)

    # Pack w2 | w3 | w4_pad into one bf16 buffer -> one DMA instead of three.
    w4p = jnp.pad(params["w4"], ((0, 0), (0, out_pad - out_size)))
    wpack = jnp.concatenate([params["w2"], params["w3"], w4p], axis=1).astype(jnp.bfloat16)

    # All small per-layer vectors in one (8, lin1) f32 buffer -> one tiny DMA.
    b4_row = jnp.pad(params["b4"], ((0, 0), (0, lin1 - out_size)))
    vec = jnp.concatenate(
        [params["g1"], params["be1"],
         params["g2"], params["be2"],
         params["g3"], params["be3"],
         b4_row, jnp.zeros((1, lin1), jnp.float32)],
        axis=0)

    return {
        "w1p": w1p, "wpack": wpack, "vec": vec,
        "in_size": in_size, "in_pad": in_pad,
        "lin1": lin1, "lin2": lin2, "lin3": lin3,
        "out_size": out_size, "out_pad": out_pad,
    }


def simple_dense_net_forward(x_nchw, packed):
    """x_nchw: [B, C, H, W] float32. packed: output of prepare_params()."""
    B = x_nchw.shape[0]
    in_size, in_pad = packed["in_size"], packed["in_pad"]
    lin1, lin2, lin3 = packed["lin1"], packed["lin2"], packed["lin3"]
    out_size, out_pad = packed["out_size"], packed["out_pad"]

    x = x_nchw.reshape(B, -1).astype(jnp.float32)     # same as torch .view(batch, -1)
    assert x.shape[1] == in_size
    if in_pad != in_size:
        x = jnp.pad(x, ((0, 0), (0, in_pad - in_size)))
    x = x.astype(jnp.bfloat16)

    w1p, wpack, vec = packed["w1p"], packed["wpack"], packed["vec"]

    # Advisory cost hint for the XLA scheduler.
    flops = 2 * B * (in_pad * lin1 + lin1 * lin2 + lin2 * lin3 + lin3 * out_pad)
    bytes_accessed = (x.size * 2 + w1p.size * 2 + wpack.size * 2
                      + vec.size * 4 + B * out_pad * 4)
    transcendentals = lin1 + lin2 + lin3              # per-column rsqrt in the three BNs

    vmem_spec = pl.BlockSpec(memory_space=pltpu.MemorySpace.VMEM)
    kernel = _make_kernel(lin2, lin3, out_pad)

    out_padded = pl.pallas_call(
        kernel,
        out_shape=jax.ShapeDtypeStruct((B, out_pad), jnp.float32),
        in_specs=[vmem_spec] * 4,
        out_specs=vmem_spec,
        cost_estimate=pl.CostEstimate(flops=flops,
                                      transcendentals=transcendentals,
                                      bytes_accessed=bytes_accessed),
        compiler_params=pltpu.CompilerParams(vmem_limit_bytes=4 * 1024 * 1024),
    )(x, w1p, wpack, vec)

    return out_padded[:, :out_size]


def init_params(key, input_size=784, lin1=256, lin2=256, lin3=256, out=10):
    """Deterministic synthetic init (Linear ~ uniform(+-1/sqrt(fan_in)), BN gamma=1, beta=0)."""
    ks = jax.random.split(key, 8)

    def lin_init(kw, kb, fan_in, fan_out):
        bound = 1.0 / jnp.sqrt(jnp.float32(fan_in))
        w = jax.random.uniform(kw, (fan_in, fan_out), jnp.float32, -bound, bound)
        b = jax.random.uniform(kb, (1, fan_out), jnp.float32, -bound, bound)
        return w, b

    w1, b1 = lin_init(ks[0], ks[1], input_size, lin1)
    w2, b2 = lin_init(ks[2], ks[3], lin1, lin2)
    w3, b3 = lin_init(ks[4], ks[5], lin2, lin3)
    w4, b4 = lin_init(ks[6], ks[7], lin3, out)

    return {
        "w1": w1, "b1": b1, "g1": jnp.ones((1, lin1), jnp.float32), "be1": jnp.zeros((1, lin1), jnp.float32),
        "w2": w2, "b2": b2, "g2": jnp.ones((1, lin2), jnp.float32), "be2": jnp.zeros((1, lin2), jnp.float32),
        "w3": w3, "b3": b3, "g3": jnp.ones((1, lin3), jnp.float32), "be3": jnp.zeros((1, lin3), jnp.float32),
        "w4": w4, "b4": b4,
    }


def _reference_forward(x_nchw, params):
    """Pure-JAX reference mirroring the kernel's bf16 weight/activation precision.

    Keeps the pre-BN biases b1/b2/b3 (as PyTorch does); they are cancelled exactly by the
    training-mode BatchNorm mean subtraction, so dropping them in the kernel is exact.
    """
    B = x_nchw.shape[0]
    h = x_nchw.reshape(B, -1).astype(jnp.bfloat16)
    for i in (1, 2, 3):
        w = params[f"w{i}"].astype(jnp.bfloat16)
        h = jnp.dot(h, w, preferred_element_type=jnp.float32) + params[f"b{i}"]
        mean = h.mean(0, keepdims=True)
        var = ((h - mean) ** 2).mean(0, keepdims=True)
        h = (h - mean) / jnp.sqrt(var + EPS) * params[f"g{i}"] + params[f"be{i}"]
        h = jnp.maximum(h, 0.0).astype(jnp.bfloat16)
    w4 = params["w4"].astype(jnp.bfloat16)
    return jnp.dot(h, w4, preferred_element_type=jnp.float32) + params["b4"]


if __name__ == "__main__":
    key = jax.random.PRNGKey(0)
    kx, kp = jax.random.split(key)

    # Input consistent with forward(): [B, C, W, H] flattened to input_size = C*W*H = 784.
    # B > 1 is required for meaningful training-mode BatchNorm batch statistics.
    B, C, W, H = 8, 1, 28, 28
    x = jax.random.normal(kx, (B, C, W, H), jnp.float32)

    params = init_params(kp, input_size=C * W * H, lin1=256, lin2=256, lin3=256, out=10)
    packed = prepare_params(params)          # one-time weight packing, reused every call

    out = simple_dense_net_forward(x, packed)
    out = jax.block_until_ready(out)

    ref = _reference_forward(x, params)
    assert out.shape == (B, 10), out.shape
    # bf16 weights/activations -> tolerance relaxed relative to an f32-only check.
    assert jnp.allclose(out, ref, atol=1e-2, rtol=1e-2), float(jnp.max(jnp.abs(out - ref)))

    print("KERNEL_OK")
</pallas_src>

<mosaic_0001>
module attributes {stable_mosaic.version = 11 : i64} {
  func.func @_mlp_kernel(%arg0: memref<8x896xbf16, #tpu.memory_space<vmem>>, %arg1: memref<896x256xbf16, #tpu.memory_space<vmem>>, %arg2: memref<256x640xbf16, #tpu.memory_space<vmem>>, %arg3: memref<8x256xf32, #tpu.memory_space<vmem>>, %arg4: memref<8x128xf32, #tpu.memory_space<vmem>>) attributes {dimension_semantics = [], scalar_prefetch = 0 : i64, scratch_operands = 0 : i64, tpu.core_type = #tpu.core_type<tc>} {
    %c0 = arith.constant 0 : index
    %c0_0 = arith.constant 0 : index
    %0 = vector.load %arg2[%c0, %c0_0] : memref<256x640xbf16, #tpu.memory_space<vmem>>, vector<256x256xbf16>
    %c0_1 = arith.constant 0 : index
    %c256 = arith.constant 256 : index
    %1 = vector.load %arg2[%c0_1, %c256] : memref<256x640xbf16, #tpu.memory_space<vmem>>, vector<256x256xbf16>
    %c0_2 = arith.constant 0 : index
    %c512 = arith.constant 512 : index
    %2 = vector.load %arg2[%c0_2, %c512] : memref<256x640xbf16, #tpu.memory_space<vmem>>, vector<256x128xbf16>
    %c0_3 = arith.constant 0 : index
    %c0_4 = arith.constant 0 : index
    %3 = vector.load %arg0[%c0_3, %c0_4] : memref<8x896xbf16, #tpu.memory_space<vmem>>, vector<8x896xbf16>
    %c0_5 = arith.constant 0 : index
    %c0_6 = arith.constant 0 : index
    %4 = vector.load %arg1[%c0_5, %c0_6] : memref<896x256xbf16, #tpu.memory_space<vmem>>, vector<896x256xbf16>
    %cst = arith.constant dense<0.000000e+00> : vector<8x256xf32>
    %5 = tpu.matmul %3, %4, %cst {dimension_numbers = #tpu.dot_dimension_numbers<[1], [0], [0], [1], [0, 0, 1, 1], [], []>} : vector<8x896xbf16>, vector<896x256xbf16>, vector<8x256xf32> -> vector<8x256xf32>
    %c0_7 = arith.constant 0 : index
    %c0_8 = arith.constant 0 : index
    %6 = vector.load %arg3[%c0_7, %c0_8] : memref<8x256xf32, #tpu.memory_space<vmem>>, vector<1x256xf32>
    %c1 = arith.constant 1 : index
    %c0_9 = arith.constant 0 : index
    %7 = vector.load %arg3[%c1, %c0_9] : memref<8x256xf32, #tpu.memory_space<vmem>>, vector<1x256xf32>
    %cst_10 = arith.constant dense<0.000000e+00> : vector<256xf32>
    %8 = vector.multi_reduction <add>, %5, %cst_10 [0] : vector<8x256xf32> to vector<256xf32>
    %9 = vector.shape_cast %8 : vector<256xf32> to vector<1x256xf32>
    %cst_11 = arith.constant 8.000000e+00 : f32
    %10 = vector.broadcast %cst_11 : f32 to vector<1x256xf32>
    %11 = arith.divf %9, %10 : vector<1x256xf32>
    %12 = arith.mulf %5, %5 : vector<8x256xf32>
    %cst_12 = arith.constant dense<0.000000e+00> : vector<256xf32>
    %13 = vector.multi_reduction <add>, %12, %cst_12 [0] : vector<8x256xf32> to vector<256xf32>
    %14 = vector.shape_cast %13 : vector<256xf32> to vector<1x256xf32>
    %cst_13 = arith.constant 8.000000e+00 : f32
    %15 = vector.broadcast %cst_13 : f32 to vector<1x256xf32>
    %16 = arith.divf %14, %15 : vector<1x256xf32>
    %17 = arith.mulf %11, %11 : vector<1x256xf32>
    %18 = arith.subf %16, %17 : vector<1x256xf32>
    %cst_14 = arith.constant 0.000000e+00 : f32
    %19 = vector.broadcast %cst_14 : f32 to vector<1x256xf32>
    %20 = arith.maximumf %18, %19 : vector<1x256xf32>
    %cst_15 = arith.constant 9.99999974E-6 : f32
    %21 = vector.broadcast %cst_15 : f32 to vector<1x256xf32>
    %22 = arith.addf %20, %21 : vector<1x256xf32>
    %23 = math.rsqrt %22 : vector<1x256xf32>
    %24 = arith.mulf %6, %23 : vector<1x256xf32>
    %25 = arith.mulf %11, %24 : vector<1x256xf32>
    %26 = arith.subf %7, %25 : vector<1x256xf32>
    %27 = vector.broadcast %24 : vector<1x256xf32> to vector<8x256xf32>
    %28 = arith.mulf %5, %27 : vector<8x256xf32>
    %29 = vector.broadcast %26 : vector<1x256xf32> to vector<8x256xf32>
    %30 = arith.addf %28, %29 : vector<8x256xf32>
    %cst_16 = arith.constant 0.000000e+00 : f32
    %31 = vector.broadcast %cst_16 : f32 to vector<8x256xf32>
    %32 = arith.maximumf %30, %31 : vector<8x256xf32>
    %33 = arith.truncf %32 : vector<8x256xf32> to vector<8x256xbf16>
    %cst_17 = arith.constant dense<0.000000e+00> : vector<8x256xf32>
    %34 = tpu.matmul %33, %0, %cst_17 {dimension_numbers = #tpu.dot_dimension_numbers<[1], [0], [0], [1], [0, 0, 1, 1], [], []>} : vector<8x256xbf16>, vector<256x256xbf16>, vector<8x256xf32> -> vector<8x256xf32>
    %c2 = arith.constant 2 : index
    %c0_18 = arith.constant 0 : index
    %35 = vector.load %arg3[%c2, %c0_18] : memref<8x256xf32, #tpu.memory_space<vmem>>, vector<1x256xf32>
    %c3 = arith.constant 3 : index
    %c0_19 = arith.constant 0 : index
    %36 = vector.load %arg3[%c3, %c0_19] : memref<8x256xf32, #tpu.memory_space<vmem>>, vector<1x256xf32>
    %cst_20 = arith.constant dense<0.000000e+00> : vector<256xf32>
    %37 = vector.multi_reduction <add>, %34, %cst_20 [0] : vector<8x256xf32> to vector<256xf32>
    %38 = vector.shape_cast %37 : vector<256xf32> to vector<1x256xf32>
    %cst_21 = arith.constant 8.000000e+00 : f32
    %39 = vector.broadcast %cst_21 : f32 to vector<1x256xf32>
    %40 = arith.divf %38, %39 : vector<1x256xf32>
    %41 = arith.mulf %34, %34 : vector<8x256xf32>
    %cst_22 = arith.constant dense<0.000000e+00> : vector<256xf32>
    %42 = vector.multi_reduction <add>, %41, %cst_22 [0] : vector<8x256xf32> to vector<256xf32>
    %43 = vector.shape_cast %42 : vector<256xf32> to vector<1x256xf32>
    %cst_23 = arith.constant 8.000000e+00 : f32
    %44 = vector.broadcast %cst_23 : f32 to vector<1x256xf32>
    %45 = arith.divf %43, %44 : vector<1x256xf32>
    %46 = arith.mulf %40, %40 : vector<1x256xf32>
    %47 = arith.subf %45, %46 : vector<1x256xf32>
    %cst_24 = arith.constant 0.000000e+00 : f32
    %48 = vector.broadcast %cst_24 : f32 to vector<1x256xf32>
    %49 = arith.maximumf %47, %48 : vector<1x256xf32>
    %cst_25 = arith.constant 9.99999974E-6 : f32
    %50 = vector.broadcast %cst_25 : f32 to vector<1x256xf32>
    %51 = arith.addf %49, %50 : vector<1x256xf32>
    %52 = math.rsqrt %51 : vector<1x256xf32>
    %53 = arith.mulf %35, %52 : vector<1x256xf32>
    %54 = arith.mulf %40, %53 : vector<1x256xf32>
    %55 = arith.subf %36, %54 : vector<1x256xf32>
    %56 = vector.broadcast %53 : vector<1x256xf32> to vector<8x256xf32>
    %57 = arith.mulf %34, %56 : vector<8x256xf32>
    %58 = vector.broadcast %55 : vector<1x256xf32> to vector<8x256xf32>
    %59 = arith.addf %57, %58 : vector<8x256xf32>
    %cst_26 = arith.constant 0.000000e+00 : f32
    %60 = vector.broadcast %cst_26 : f32 to vector<8x256xf32>
    %61 = arith.maximumf %59, %60 : vector<8x256xf32>
    %62 = arith.truncf %61 : vector<8x256xf32> to vector<8x256xbf16>
    %cst_27 = arith.constant dense<0.000000e+00> : vector<8x256xf32>
    %63 = tpu.matmul %62, %1, %cst_27 {dimension_numbers = #tpu.dot_dimension_numbers<[1], [0], [0], [1], [0, 0, 1, 1], [], []>} : vector<8x256xbf16>, vector<256x256xbf16>, vector<8x256xf32> -> vector<8x256xf32>
    %c4 = arith.constant 4 : index
    %c0_28 = arith.constant 0 : index
    %64 = vector.load %arg3[%c4, %c0_28] : memref<8x256xf32, #tpu.memory_space<vmem>>, vector<1x256xf32>
    %c5 = arith.constant 5 : index
    %c0_29 = arith.constant 0 : index
    %65 = vector.load %arg3[%c5, %c0_29] : memref<8x256xf32, #tpu.memory_space<vmem>>, vector<1x256xf32>
    %cst_30 = arith.constant dense<0.000000e+00> : vector<256xf32>
    %66 = vector.multi_reduction <add>, %63, %cst_30 [0] : vector<8x256xf32> to vector<256xf32>
    %67 = vector.shape_cast %66 : vector<256xf32> to vector<1x256xf32>
    %cst_31 = arith.constant 8.000000e+00 : f32
    %68 = vector.broadcast %cst_31 : f32 to vector<1x256xf32>
    %69 = arith.divf %67, %68 : vector<1x256xf32>
    %70 = arith.mulf %63, %63 : vector<8x256xf32>
    %cst_32 = arith.constant dense<0.000000e+00> : vector<256xf32>
    %71 = vector.multi_reduction <add>, %70, %cst_32 [0] : vector<8x256xf32> to vector<256xf32>
    %72 = vector.shape_cast %71 : vector<256xf32> to vector<1x256xf32>
    %cst_33 = arith.constant 8.000000e+00 : f32
    %73 = vector.broadcast %cst_33 : f32 to vector<1x256xf32>
    %74 = arith.divf %72, %73 : vector<1x256xf32>
    %75 = arith.mulf %69, %69 : vector<1x256xf32>
    %76 = arith.subf %74, %75 : vector<1x256xf32>
    %cst_34 = arith.constant 0.000000e+00 : f32
    %77 = vector.broadcast %cst_34 : f32 to vector<1x256xf32>
    %78 = arith.maximumf %76, %77 : vector<1x256xf32>
    %cst_35 = arith.constant 9.99999974E-6 : f32
    %79 = vector.broadcast %cst_35 : f32 to vector<1x256xf32>
    %80 = arith.addf %78, %79 : vector<1x256xf32>
    %81 = math.rsqrt %80 : vector<1x256xf32>
    %82 = arith.mulf %64, %81 : vector<1x256xf32>
    %83 = arith.mulf %69, %82 : vector<1x256xf32>
    %84 = arith.subf %65, %83 : vector<1x256xf32>
    %85 = vector.broadcast %82 : vector<1x256xf32> to vector<8x256xf32>
    %86 = arith.mulf %63, %85 : vector<8x256xf32>
    %87 = vector.broadcast %84 : vector<1x256xf32> to vector<8x256xf32>
    %88 = arith.addf %86, %87 : vector<8x256xf32>
    %cst_36 = arith.constant 0.000000e+00 : f32
    %89 = vector.broadcast %cst_36 : f32 to vector<8x256xf32>
    %90 = arith.maximumf %88, %89 : vector<8x256xf32>
    %91 = arith.truncf %90 : vector<8x256xf32> to vector<8x256xbf16>
    %cst_37 = arith.constant dense<0.000000e+00> : vector<8x128xf32>
    %92 = tpu.matmul %91, %2, %cst_37 {dimension_numbers = #tpu.dot_dimension_numbers<[1], [0], [0], [1], [0, 0, 1, 1], [], []>} : vector<8x256xbf16>, vector<256x128xbf16>, vector<8x128xf32> -> vector<8x128xf32>
    %c6 = arith.constant 6 : index
    %c0_38 = arith.constant 0 : index
    %93 = vector.load %arg3[%c6, %c0_38] : memref<8x256xf32, #tpu.memory_space<vmem>>, vector<1x128xf32>
    %94 = vector.broadcast %93 : vector<1x128xf32> to vector<8x128xf32>
    %95 = arith.addf %92, %94 : vector<8x128xf32>
    %c0_39 = arith.constant 0 : index
    %c0_40 = arith.constant 0 : index
    %96 = vector.load %arg4[%c0_39, %c0_40] : memref<8x128xf32, #tpu.memory_space<vmem>>, vector<8x128xf32>
    tpu.vector_store %arg4[%c0_39, %c0_40], %95 {strides = array<i32>} : memref<8x128xf32, #tpu.memory_space<vmem>>, vector<8x128xf32>,
    return
  }
}

</mosaic_0001>

<bundles_post_ra>
// kernel: tpu_custom_call.1
= control target key start
LH: loop header
LB: loop body
LE: loop exit
PB: predicated region body
PF: predicated region fallthrough
CT: control target
= control target key end

     0   :  { %9 = vsyncpa [#allocation3], 0  ;;  %s3211_s0 = inlined_call_operand.hbm [shape: bf16[8,896], index: 0, kind: input, shape index: {}]   ;;  %s3212_s1 = inlined_call_operand.hbm [shape: bf16[896,256], index: 1, kind: input, shape index: {}]   ;;  %s3213_s2 = inlined_call_operand.hbm [shape: bf16[256,640], index: 2, kind: input, shape index: {}]   ;;  %s3214_s3 = inlined_call_operand.hbm [shape: f32[8,256], index: 3, kind: input, shape index: {}]   ;;  %s3215_s4 = inlined_call_operand.hbm [shape: f32[8,128], index: 4, kind: output, shape index: {}]  }
   0x1   :  { %10 = vsyncpa [#allocation6], 0 }
   0x2   :  { %11 = vsyncpa [#allocation9], 0  ;;  %s28_s17 = sshll.u32 %s3212_s1, 4  ;;  %s29_s17 = int_to_ptr.hbm [resolvable:$true] %s28_s17 }
   0x3   :  { %12 = vsyncpa [#allocation4], 0  ;;  %s3024_s18 = smov [#allocation5]   ;;  %s18_s22 = sshll.u32 %s3211_s0, 4  ;;  %s19_s22 = int_to_ptr.hbm [resolvable:$true] %s18_s22 }
   0x4   :  { %s30_s19 = sshll.u32 %s3024_s18, 4  ;;  %s3025_s23 = smov 128   ;;  %s31_s19 = int_to_ptr.vmem [resolvable:$true] %s30_s19 }
   0x5   :  { %s3026_s24 = smov 8   ;;  %s3027_s25 = smov [#allocation2]  }
   0x6   :  { %36 = dma.hbm_to_vmem [thread:$0]  %s29_s17, 14336, %s31_s19, [#allocation6], %s3025_s23, %s3025_s23, %s3026_s24  }
   0x7   :  { %s20_s26 = sshll.u32 %s3027_s25, 4  ;;  %s41_s29 = sshll.u32 %s3213_s2, 4  ;;  %s21_s26 = int_to_ptr.vmem [resolvable:$true] %s20_s26  ;;  %s42_s29 = int_to_ptr.hbm [resolvable:$true] %s41_s29 }
   0x8   :  { %23 = dma.hbm_to_vmem [thread:$0]  %s19_s22, 448, %s21_s26, [#allocation3]  }
   0x9   :  { %s3028_s1 = smov [#allocation7]   ;;  %s55_s0 = sshll.u32 %s3214_s3, 4  ;;  %s56_s0 = int_to_ptr.hbm [resolvable:$true] %s55_s0 }
   0xa   :  { %s43_s30 = sshll.u32 %s3028_s1, 4  ;;  %s3029_s7 = smov 320   ;;  %s44_s30 = int_to_ptr.vmem [resolvable:$true] %s43_s30 }
   0xb   :  { %s3030_s8 = smov 20   ;;  %s3031_s9 = smov [#allocation8]  }
   0xc   :  { %49 = dma.hbm_to_vmem [thread:$0]  %s42_s29, 10240, %s44_s30, [#allocation6], %s3029_s7, %s3029_s7, %s3030_s8  }
   0xd   :  { %s57_s10 = sshll.u32 %s3031_s9, 4  ;;  %s58_s10 = int_to_ptr.vmem [resolvable:$true] %s57_s10 }
   0xe   :  { %60 = dma.hbm_to_vmem [thread:$0]  %s56_s0, 256, %s58_s10, [#allocation9]  }
   0xf   :  { %3016 = dma.done.wait [#allocation3], 448  }
  0x10   :  { %3017 = vsyncadd [#allocation3], 4294966848 }
  0x11   :  { %3018 = dma.done.wait [#allocation6], 24576  }
  0x12   :  { %3019 = vsyncadd [#allocation6], 4294942720 }
  0x13   :  { %3020 = dma.done.wait [#allocation9], 256  }
  0x14   :  { %3021 = vsyncadd [#allocation9], 4294967040  ;;  %v1970_v0 = vld [vmem:[#allocation5 + $0x70] sm:$0xf]  ;;  %v2775_v1 = vld [vmem:[#allocation5 + $0x74] sm:$0xf0] }
  0x15   :  { %v2034_v2 = vld [vmem:[#allocation5 + $0xf0] sm:$0xf]  ;;  %v1971_v3 = vor.u32 %v2775_v1, %v1970_v0  ;;  %v2791_v4 = vld [vmem:[#allocation5 + $0xf4] sm:$0xf0]  ;;  %v1962_v9 = vld [vmem:[#allocation5 + $0x60] sm:$0xf] }
  0x16   :  { %v2098_v5 = vld [vmem:[#allocation5 + $0x170] sm:$0xf]  ;;  %v2807_v6 = vld [vmem:[#allocation5 + $0x174] sm:$0xf0]  ;;  %v2035_v7 = vor.u32 %v2791_v4, %v2034_v2  ;;  %v2773_v10 = vld [vmem:[#allocation5 + $0x64] sm:$0xf0] }
  0x17   :  { %v2099_v8 = vor.u32 %v2807_v6, %v2098_v5  ;;  %v2026_v11 = vld [vmem:[#allocation5 + $0xe0] sm:$0xf]  ;;  %874 = vmatpush.bf16.msra.mxu0 %v1971_v3  ;;  %v1963_v12 = vor.u32 %v2773_v10, %v1962_v9  ;;  %v2789_v13 = vld [vmem:[#allocation5 + $0xe4] sm:$0xf0]  ;;  %v1954_v18 = vld [vmem:[#allocation5 + $0x50] sm:$0xf] }
  0x18   :  { %v2090_v14 = vld [vmem:[#allocation5 + $0x160] sm:$0xf]  ;;  %v2805_v15 = vld [vmem:[#allocation5 + $0x164] sm:$0xf0]  ;;  %887 = vmatpush.bf16.msra.mxu1 %v2035_v7  ;;  %v2027_v16 = vor.u32 %v2789_v13, %v2026_v11  ;;  %v2771_v19 = vld [vmem:[#allocation5 + $0x54] sm:$0xf0] }
  0x19   :  { %900 = vmatpush.bf16.msra.mxu2 %v2099_v8  ;;  %v2091_v17 = vor.u32 %v2805_v15, %v2090_v14  ;;  %v2018_v20 = vld [vmem:[#allocation5 + $0xd0] sm:$0xf]  ;;  %v2787_v21 = vld [vmem:[#allocation5 + $0xd4] sm:$0xf0]  ;;  %v1955_v26 = vor.u32 %v2771_v19, %v1954_v18  ;;  %v1946_v28 = vld [vmem:[#allocation5 + $0x40] sm:$0xf] }
  0x1a   :  { %v2082_v22 = vld [vmem:[#allocation5 + $0x150] sm:$0xf]  ;;  %v2803_v23 = vld [vmem:[#allocation5 + $0x154] sm:$0xf0]  ;;  %v2769_v29 = vld [vmem:[#allocation5 + $0x44] sm:$0xf0]  ;;  %v2019_v30 = vor.u32 %v2787_v21, %v2018_v20 }
  0x1b   :  { %v2162_v24 = vld [vmem:[#allocation5 + $0x1f0] sm:$0xf]  ;;  %v2823_v25 = vld [vmem:[#allocation5 + $0x1f4] sm:$0xf0]  ;;  %875 = vmatpush.bf16.msra.mxu0 %v1963_v12  ;;  %v2083_v31 = vor.u32 %v2803_v23, %v2082_v22  ;;  %v2010_v32 = vld [vmem:[#allocation5 + $0xc0] sm:$0xf]  ;;  %v1947_v39 = vor.u32 %v2769_v29, %v1946_v28 }
  0x1c   :  { %v2163_v27 = vor.u32 %v2823_v25, %v2162_v24  ;;  %888 = vmatpush.bf16.msra.mxu1 %v2027_v16  ;;  %v2785_v33 = vld [vmem:[#allocation5 + $0xc4] sm:$0xf0]  ;;  %v2154_v34 = vld [vmem:[#allocation5 + $0x1e0] sm:$0xf]  ;;  %v2146_v40 = vld [vmem:[#allocation5 + $0x1d0] sm:$0xf] }
  0x1d   :  { %901 = vmatpush.bf16.msra.mxu2 %v2091_v17  ;;  %v2074_v35 = vld [vmem:[#allocation5 + $0x140] sm:$0xf]  ;;  %v2801_v36 = vld [vmem:[#allocation5 + $0x144] sm:$0xf0]  ;;  %v2819_v41 = vld [vmem:[#allocation5 + $0x1d4] sm:$0xf0]  ;;  %v2011_v42 = vor.u32 %v2785_v33, %v2010_v32 }
  0x1e   :  { %913 = vmatpush.bf16.msra.mxu3 %v2163_v27  ;;  %v2821_v37 = vld [vmem:[#allocation5 + $0x1e4] sm:$0xf0]  ;;  %v2075_v43 = vor.u32 %v2801_v36, %v2074_v35  ;;  %v1938_v44 = vld [vmem:[#allocation5 + $0x30] sm:$0xf]  ;;  %v2767_v45 = vld [vmem:[#allocation5 + $0x34] sm:$0xf0]  ;;  %v2147_v50 = vor.u32 %v2819_v41, %v2146_v40 }
  0x1f   :  { %v2155_v38 = vor.u32 %v2821_v37, %v2154_v34  ;;  %876 = vmatpush.bf16.msra.mxu0 %v1955_v26  ;;  %v2002_v46 = vld [vmem:[#allocation5 + $0xb0] sm:$0xf]  ;;  %v2783_v47 = vld [vmem:[#allocation5 + $0xb4] sm:$0xf0]  ;;  %v2138_v51 = vld [vmem:[#allocation5 + $0x1c0] sm:$0xf]  ;;  %v1939_v53 = vor.u32 %v2767_v45, %v1938_v44 }
  0x20   :  { %889 = vmatpush.bf16.msra.mxu1 %v2019_v30  ;;  %v2066_v48 = vld [vmem:[#allocation5 + $0x130] sm:$0xf]  ;;  %v2799_v49 = vld [vmem:[#allocation5 + $0x134] sm:$0xf0]  ;;  %v2817_v52 = vld [vmem:[#allocation5 + $0x1c4] sm:$0xf0]  ;;  %v2003_v54 = vor.u32 %v2783_v47, %v2002_v46 }
  0x21   :  { %902 = vmatpush.bf16.msra.mxu2 %v2083_v31  ;;  %v2067_v55 = vor.u32 %v2799_v49, %v2066_v48  ;;  %v1930_v56 = vld [vmem:[#allocation5 + $0x20] sm:$0xf]  ;;  %v2765_v57 = vld [vmem:[#allocation5 + $0x24] sm:$0xf0]  ;;  %v2139_v62 = vor.u32 %v2817_v52, %v2138_v51  ;;  %v2130_v63 = vld [vmem:[#allocation5 + $0x1b0] sm:$0xf] }
  0x22   :  { %914 = vmatpush.bf16.msra.mxu3 %v2155_v38  ;;  %v1994_v58 = vld [vmem:[#allocation5 + $0xa0] sm:$0xf]  ;;  %v2781_v59 = vld [vmem:[#allocation5 + $0xa4] sm:$0xf0]  ;;  %v2815_v0 = vld [vmem:[#allocation5 + $0x1b4] sm:$0xf0]  ;;  %v1931_v1 = vor.u32 %v2765_v57, %v1930_v56 }
  0x23   :  { %877 = vmatpush.bf16.msra.mxu0 %v1947_v39  ;;  %v2058_v60 = vld [vmem:[#allocation5 + $0x120] sm:$0xf]  ;;  %v2797_v61 = vld [vmem:[#allocation5 + $0x124] sm:$0xf0]  ;;  %v1995_v2 = vor.u32 %v2781_v59, %v1994_v58  ;;  %v1922_v4 = vld [vmem:[#allocation5 + $0x10] sm:$0xf]  ;;  %v2131_v10 = vor.u32 %v2815_v0, %v2130_v63 }
  0x24   :  { %890 = vmatpush.bf16.msra.mxu1 %v2011_v42  ;;  %v2059_v3 = vor.u32 %v2797_v61, %v2058_v60  ;;  %v2763_v5 = vld [vmem:[#allocation5 + $0x14] sm:$0xf0]  ;;  %v1986_v6 = vld [vmem:[#allocation5 + $0x90] sm:$0xf]  ;;  %v2122_v11 = vld [vmem:[#allocation5 + $0x1a0] sm:$0xf] }
  0x25   :  { %903 = vmatpush.bf16.msra.mxu2 %v2075_v43  ;;  %v2779_v7 = vld [vmem:[#allocation5 + $0x94] sm:$0xf0]  ;;  %v2050_v8 = vld [vmem:[#allocation5 + $0x110] sm:$0xf]  ;;  %v2813_v12 = vld [vmem:[#allocation5 + $0x1a4] sm:$0xf0]  ;;  %v1923_v13 = vor.u32 %v2763_v5, %v1922_v4 }
  0x26   :  { %915 = vmatpush.bf16.msra.mxu3 %v2147_v50  ;;  %v2795_v9 = vld [vmem:[#allocation5 + $0x114] sm:$0xf0]  ;;  %v1914_v14 = vld [vmem:[#allocation5] sm:$0xf]  ;;  %v2761_v15 = vld [vmem:[#allocation5 + $0x4] sm:$0xf0]  ;;  %v1987_v16 = vor.u32 %v2779_v7, %v1986_v6  ;;  %v2123_v24 = vor.u32 %v2813_v12, %v2122_v11 }
  0x27   :  { %878 = vmatpush.bf16.msra.mxu0 %v1939_v53  ;;  %v2051_v17 = vor.u32 %v2795_v9, %v2050_v8  ;;  %v1978_v18 = vld [vmem:[#allocation5 + $0x80] sm:$0xf]  ;;  %v2777_v19 = vld [vmem:[#allocation5 + $0x84] sm:$0xf0]  ;;  %v2226_v22 = vld [vmem:[#allocation5 + $0x270] sm:$0xf]  ;;  %v1915_v28 = vor.u32 %v2761_v15, %v1914_v14 }
  0x28   :  { %891 = vmatpush.bf16.msra.mxu1 %v2003_v54  ;;  %v2042_v20 = vld [vmem:[#allocation5 + $0x100] sm:$0xf]  ;;  %v2793_v21 = vld [vmem:[#allocation5 + $0x104] sm:$0xf0]  ;;  %v2839_v23 = vld [vmem:[#allocation5 + $0x274] sm:$0xf0]  ;;  %v1979_v32 = vor.u32 %v2777_v19, %v1978_v18 }
  0x29   :  { %904 = vmatpush.bf16.msra.mxu2 %v2067_v55  ;;  %v2290_v25 = vld [vmem:[#allocation5 + $0x2f0] sm:$0xf]  ;;  %v2855_v26 = vld [vmem:[#allocation5 + $0x2f4] sm:$0xf0]  ;;  %v2043_v33 = vor.u32 %v2793_v21, %v2042_v20  ;;  %v2218_v34 = vld [vmem:[#allocation5 + $0x260] sm:$0xf]  ;;  %v2227_v35 = vor.u32 %v2839_v23, %v2226_v22 }
  0x2a   :  { %916 = vmatpush.bf16.msra.mxu3 %v2139_v62  ;;  %v2354_v27 = vld [vmem:[#allocation5 + $0x370] sm:$0xf]  ;;  %v2871_v29 = vld [vmem:[#allocation5 + $0x374] sm:$0xf0]  ;;  %v2291_v36 = vor.u32 %v2855_v26, %v2290_v25  ;;  %v2837_v37 = vld [vmem:[#allocation5 + $0x264] sm:$0xf0] }
  0x2b   :  { %879 = vmatpush.bf16.msra.mxu0 %v1931_v1  ;;  %v2114_v30 = vld [vmem:[#allocation5 + $0x190] sm:$0xf]  ;;  %v2811_v31 = vld [vmem:[#allocation5 + $0x194] sm:$0xf0]  ;;  %v2282_v38 = vld [vmem:[#allocation5 + $0x2e0] sm:$0xf]  ;;  %v2355_v40 = vor.u32 %v2871_v29, %v2354_v27  ;;  %v2219_v48 = vor.u32 %v2837_v37, %v2218_v34 }
  0x2c   :  { %892 = vmatpush.bf16.msra.mxu1 %v1995_v2  ;;  %v2853_v39 = vld [vmem:[#allocation5 + $0x2e4] sm:$0xf0]  ;;  %v2346_v41 = vld [vmem:[#allocation5 + $0x360] sm:$0xf]  ;;  %v2115_v43 = vor.u32 %v2811_v31, %v2114_v30  ;;  %v174_v44 = vld [vmem:[#allocation2 + $0x8] sm:$0xff]  ;;  %vm1127_vm6 = vcmask 1040384  }
  0x2d   :  { %905 = vmatpush.bf16.msra.mxu2 %v2059_v3  ;;  %v2869_v42 = vld [vmem:[#allocation5 + $0x364] sm:$0xf0]  ;;  %v2106_v45 = vld [vmem:[#allocation5 + $0x180] sm:$0xf]  ;;  %v295_v47 = vunpack.c.l.b16 %v174_v44  ;;  %v2774_v49 = vld [vmem:[#allocation5 + $0x74] sm:$0xf]  ;;  %v2283_v51 = vor.u32 %v2853_v39, %v2282_v38  ;;  %v296_v62 = vunpack.c.h.b16 %v174_v44 }
  0x2e   :  { %917 = vmatpush.bf16.msra.mxu3 %v2131_v10  ;;  %v2809_v46 = vld [vmem:[#allocation5 + $0x184] sm:$0xf0]  ;;  %v1972_v50 = vld [vmem:[#allocation5 + $0x78] sm:$0xf0]  ;;  %v2347_v52 = vor.u32 %v2869_v42, %v2346_v41  ;;  %v2210_v53 = vld [vmem:[#allocation5 + $0x250] sm:$0xf] }
  0x2f   :  { %880 = vmatpush.bf16.msra.mxu0 %v1923_v13  ;;  %v3071_v54 = vpack.c.b16 %v295_v47, %v295_v47  ;;  %v173_v55 = vld [vmem:[#allocation2] sm:$0xff]  ;;  %v2835_v56 = vld [vmem:[#allocation5 + $0x254] sm:$0xf0]  ;;  %v2274_v57 = vld [vmem:[#allocation5 + $0x2d0] sm:$0xf]  ;;  %v2107_v59 = vor.u32 %v2809_v46, %v2106_v45  ;;  %v1975_v1 = vor.u32 %v2774_v49, %v1972_v50  ;;  %v3078_v13 = vpack.c.b16 %v296_v62, %v296_v62  ;;  %s3033_s2 = smov [#allocation10]  }
  0x30   :  { %893 = vmatpush.bf16.msra.mxu1 %v1987_v16  ;;  %v2851_v58 = vld [vmem:[#allocation5 + $0x2d4] sm:$0xf0]  ;;  %v293_v60 = vunpack.c.l.b16 %v173_v55  ;;  %v294_v61 = vunpack.c.h.b16 %v173_v55  ;;  %v2338_v63 = vld [vmem:[#allocation5 + $0x350] sm:$0xf]  ;;  %v2772_v2 = vld [vmem:[#allocation5 + $0x64] sm:$0xf]  ;;  %v2211_v6 = vor.u32 %v2835_v56, %v2210_v53 }
  0x31   :  { %906 = vmatpush.bf16.msra.mxu2 %v2051_v17  ;;  %v2867_v0 = vld [vmem:[#allocation5 + $0x354] sm:$0xf0]  ;;  %v1964_v3 = vld [vmem:[#allocation5 + $0x68] sm:$0xf0]  ;;  %v2275_v7 = vor.u32 %v2851_v58, %v2274_v57  ;;  %v2202_v8 = vld [vmem:[#allocation5 + $0x240] sm:$0xf] }
  0x32   :  { %918 = vmatpush.bf16.msra.mxu3 %v2123_v24  ;;  %v3074_v4 = vpack.c.b16 %v293_v60, %v293_v60  ;;  %v3076_v5 = vpack.c.b16 %v294_v61, %v294_v61  ;;  %v2339_v9 = vor.u32 %v2867_v0, %v2338_v63  ;;  %v2833_v10 = vld [vmem:[#allocation5 + $0x244] sm:$0xf0]  ;;  %v2266_v11 = vld [vmem:[#allocation5 + $0x2c0] sm:$0xf]  ;;  %v1967_v16 = vor.u32 %v2772_v2, %v1964_v3  ;;  %v2770_v17 = vld [vmem:[#allocation5 + $0x54] sm:$0xf] }
  0x33   :  { %881 = vmatpush.bf16.msra.mxu0 %v1915_v28  ;;  %v2849_v12 = vld [vmem:[#allocation5 + $0x2c4] sm:$0xf0]  ;;  %v2330_v14 = vld [vmem:[#allocation5 + $0x340] sm:$0xf]  ;;  %v1956_v18 = vld [vmem:[#allocation5 + $0x58] sm:$0xf0]  ;;  %v2203_v19 = vor.u32 %v2833_v10, %v2202_v8 }
  0x34   :  { %894 = vmatpush.bf16.msra.mxu1 %v1979_v32  ;;  %v2865_v15 = vld [vmem:[#allocation5 + $0x344] sm:$0xf0]  ;;  %v2267_v20 = vor.u32 %v2849_v12, %v2266_v11  ;;  %v2194_v21 = vld [vmem:[#allocation5 + $0x230] sm:$0xf]  ;;  %v2831_v23 = vld [vmem:[#allocation5 + $0x234] sm:$0xf0]  ;;  %v1959_v28 = vor.u32 %v2770_v17, %v1956_v18 }
  0x35   :  { %907 = vmatpush.bf16.msra.mxu2 %v2043_v33  ;;  %v2331_v22 = vor.u32 %v2865_v15, %v2330_v14  ;;  %v2258_v24 = vld [vmem:[#allocation5 + $0x2b0] sm:$0xf]  ;;  %v2847_v25 = vld [vmem:[#allocation5 + $0x2b4] sm:$0xf0]  ;;  %v2768_v29 = vld [vmem:[#allocation5 + $0x44] sm:$0xf]  ;;  %v2195_v31 = vor.u32 %v2831_v23, %v2194_v21 }
  0x36   :  { %919 = vmatpush.bf16.msra.mxu3 %v2115_v43  ;;  %882 = vmatmul.bf16.vlgmr.msra.gmra.mxu0 %v3074_v4  ;;  %v2322_v26 = vld [vmem:[#allocation5 + $0x330] sm:$0xf]  ;;  %v2863_v27 = vld [vmem:[#allocation5 + $0x334] sm:$0xf0]  ;;  %v1948_v30 = vld [vmem:[#allocation5 + $0x48] sm:$0xf0]  ;;  %v2259_v32 = vor.u32 %v2847_v25, %v2258_v24 }
  0x37   :  { %926 = vmatpush.bf16.msrb.mxu0 %v2227_v35  ;;  %895 = vmatmul.bf16.vlgmr.msra.gmra.mxu1 %v3076_v5  ;;  %v2186_v33 = vld [vmem:[#allocation5 + $0x220] sm:$0xf]  ;;  %v2323_v34 = vor.u32 %v2863_v27, %v2322_v26  ;;  %v2829_v35 = vld [vmem:[#allocation5 + $0x224] sm:$0xf0]  ;;  %v2766_v41 = vld [vmem:[#allocation5 + $0x34] sm:$0xf] }
  0x38   :  { %939 = vmatpush.bf16.msrb.mxu1 %v2291_v36  ;;  %908 = vmatmul.bf16.vlgmr.msra.gmra.mxu2 %v3071_v54  ;;  %v2250_v36 = vld [vmem:[#allocation5 + $0x2a0] sm:$0xf]  ;;  %v2845_v37 = vld [vmem:[#allocation5 + $0x2a4] sm:$0xf0]  ;;  %v1940_v42 = vld [vmem:[#allocation5 + $0x38] sm:$0xf0]  ;;  %v2187_v43 = vor.u32 %v2829_v35, %v2186_v33 }
  0x39   :  { %952 = vmatpush.bf16.msrb.mxu2 %v2355_v40  ;;  %v2314_v38 = vld [vmem:[#allocation5 + $0x320] sm:$0xf]  ;;  %v2861_v39 = vld [vmem:[#allocation5 + $0x324] sm:$0xf0]  ;;  %v1951_v40 = vor.u32 %v2768_v29, %v1948_v30  ;;  %v2251_v44 = vor.u32 %v2845_v37, %v2250_v36  ;;  %v2178_v45 = vld [vmem:[#allocation5 + $0x210] sm:$0xf] }
  0x3a   :  { %920 = vmatpush.bf16.msra.mxu3 %v2107_v59  ;;  %v2315_v46 = vor.u32 %v2861_v39, %v2314_v38  ;;  %v2827_v47 = vld [vmem:[#allocation5 + $0x214] sm:$0xf0]  ;;  %v2306_v50 = vld [vmem:[#allocation5 + $0x310] sm:$0xf]  ;;  %v2170_v53 = vld [vmem:[#allocation5 + $0x200] sm:$0xf] }
  0x3b   :  { %927 = vmatpush.bf16.msrb.mxu0 %v2219_v48  ;;  %v2242_v48 = vld [vmem:[#allocation5 + $0x290] sm:$0xf]  ;;  %v2843_v49 = vld [vmem:[#allocation5 + $0x294] sm:$0xf0]  ;;  %v2825_v55 = vld [vmem:[#allocation5 + $0x204] sm:$0xf0]  ;;  %v2179_v58 = vor.u32 %v2827_v47, %v2178_v45 }
  0x3c   :  { %940 = vmatpush.bf16.msrb.mxu1 %v2283_v51  ;;  %v2859_v51 = vld [vmem:[#allocation5 + $0x314] sm:$0xf0]  ;;  %v2764_v56 = vld [vmem:[#allocation5 + $0x24] sm:$0xf]  ;;  %v1932_v57 = vld [vmem:[#allocation5 + $0x28] sm:$0xf0]  ;;  %v2243_v59 = vor.u32 %v2843_v49, %v2242_v48  ;;  %v2171_v15 = vor.u32 %v2825_v55, %v2170_v53 }
  0x3d   :  { %953 = vmatpush.bf16.msrb.mxu2 %v2347_v52  ;;  %921 = vmatmul.bf16.vlgmr.msra.gmra.mxu3 %v3078_v13  ;;  %v1943_v52 = vor.u32 %v2766_v41, %v1940_v42  ;;  %v2234_v60 = vld [vmem:[#allocation5 + $0x280] sm:$0xf]  ;;  %v2841_v61 = vld [vmem:[#allocation5 + $0x284] sm:$0xf0]  ;;  %v175_v62 = vld [vmem:[#allocation2 + $0x10] sm:$0xff]  ;;  %v2307_v63 = vor.u32 %v2859_v51, %v2306_v50  ;;  %v1935_v8 = vor.u32 %v2764_v56, %v1932_v57  ;;  %s1898_s3 = sshll.u32 %s3033_s2, 4  ;;  %s1899_s3 = int_to_ptr.vmem [resolvable:$true] %s1898_s3 }
  0x3e   :  { %965 = vmatpush.bf16.msrb.mxu3 %v1975_v1  ;;  %v2298_v0 = vld [vmem:[#allocation5 + $0x300] sm:$0xf]  ;;  %v2857_v1 = vld [vmem:[#allocation5 + $0x304] sm:$0xf0]  ;;  %v176_v2 = vld [vmem:[#allocation2 + $0x18] sm:$0xf]  ;;  %v297_v10 = vunpack.c.l.b16 %v175_v62  ;;  %v298_v11 = vunpack.c.h.b16 %v175_v62 }
  0x3f   :  { %928 = vmatpush.bf16.msrb.mxu0 %v2211_v6  ;;  %v2790_v3 = vld [vmem:[#allocation5 + $0xf4] sm:$0xf]  ;;  %v2036_v6 = vld [vmem:[#allocation5 + $0xf8] sm:$0xf0]  ;;  %v299_v17 = vunpack.c.l.b16 %v176_v2  ;;  %v2299_v18 = vor.u32 %v2857_v1, %v2298_v0  ;;  %v2028_v21 = vld [vmem:[#allocation5 + $0xe8] sm:$0xf0] }
  0x40   :  { %941 = vmatpush.bf16.msrb.mxu1 %v2275_v7  ;;  %v2806_v7 = vld [vmem:[#allocation5 + $0x174] sm:$0xf]  ;;  %v1924_v14 = vld [vmem:[#allocation5 + $0x18] sm:$0xf0]  ;;  %v2804_v23 = vld [vmem:[#allocation5 + $0x164] sm:$0xf]  ;;  %v3083_v27 = vpack.c.b16 %v297_v10, %v297_v10  ;;  %v3085_v29 = vpack.c.b16 %v298_v11, %v298_v11 }
  0x41   :  { %954 = vmatpush.bf16.msrb.mxu2 %v2339_v9  ;;  %v2100_v9 = vld [vmem:[#allocation5 + $0x178] sm:$0xf0]  ;;  %v2762_v12 = vld [vmem:[#allocation5 + $0x14] sm:$0xf]  ;;  %v2760_v30 = vld [vmem:[#allocation5 + $0x4] sm:$0xf] }
  0x42   :  { %966 = vmatpush.bf16.msrb.mxu3 %v1967_v16  ;;  %v2235_v16 = vor.u32 %v2841_v61, %v2234_v60  ;;  %v1927_v24 = vor.u32 %v2762_v12, %v1924_v14  ;;  %v2822_v25 = vld [vmem:[#allocation5 + $0x1f4] sm:$0xf]  ;;  %v2164_v26 = vld [vmem:[#allocation5 + $0x1f8] sm:$0xf0]  ;;  %v2820_v41 = vld [vmem:[#allocation5 + $0x1e4] sm:$0xf] }
  0x43   :  { %929 = vmatpush.bf16.msrb.mxu0 %v2203_v19  ;;  %v2039_v19 = vor.u32 %v2790_v3, %v2036_v6  ;;  %v2838_v33 = vld [vmem:[#allocation5 + $0x274] sm:$0xf]  ;;  %v2167_v37 = vor.u32 %v2822_v25, %v2164_v26  ;;  %v2020_v39 = vld [vmem:[#allocation5 + $0xd8] sm:$0xf0]  ;;  %v2156_v42 = vld [vmem:[#allocation5 + $0x1e8] sm:$0xf0] }
  0x44   :  { %942 = vmatpush.bf16.msrb.mxu1 %v2267_v20  ;;  %v2788_v20 = vld [vmem:[#allocation5 + $0xe4] sm:$0xf]  ;;  %v2786_v36 = vld [vmem:[#allocation5 + $0xd4] sm:$0xf]  ;;  %v2220_v47 = vld [vmem:[#allocation5 + $0x268] sm:$0xf0]  ;;  %v2159_v50 = vor.u32 %v2820_v41, %v2156_v42 }
  0x45   :  { %955 = vmatpush.bf16.msrb.mxu2 %v2331_v22  ;;  %v2103_v22 = vor.u32 %v2806_v7, %v2100_v9  ;;  %v2031_v35 = vor.u32 %v2788_v20, %v2028_v21  ;;  %v2023_v48 = vor.u32 %v2786_v36, %v2020_v39  ;;  %v2784_v49 = vld [vmem:[#allocation5 + $0xc4] sm:$0xf]  ;;  %v2818_v53 = vld [vmem:[#allocation5 + $0x1d4] sm:$0xf]  ;;  %v2148_v55 = vld [vmem:[#allocation5 + $0x1d8] sm:$0xf0] }
  0x46   :  { %967 = vmatpush.bf16.msrb.mxu3 %v1959_v28  ;;  %v2092_v28 = vld [vmem:[#allocation5 + $0x168] sm:$0xf0]  ;;  %v2800_v56 = vld [vmem:[#allocation5 + $0x144] sm:$0xf]  ;;  %v2212_v60 = vld [vmem:[#allocation5 + $0x258] sm:$0xf0] }
  0x47   :  { %930 = vmatpush.bf16.msrb.mxu0 %v2195_v31  ;;  %v1916_v31 = vld [vmem:[#allocation5 + $0x8] sm:$0xf0]  ;;  %v2095_v38 = vor.u32 %v2804_v23, %v2092_v28  ;;  %v2782_v62 = vld [vmem:[#allocation5 + $0xb4] sm:$0xf]  ;;  %v2004_v1 = vld [vmem:[#allocation5 + $0xb8] sm:$0xf0] }
  0x48   :  { %943 = vmatpush.bf16.msrb.mxu1 %v2259_v32  ;;  %v3087_v32 = vpack.c.b16 %v299_v17, %v299_v17  ;;  %v2076_v57 = vld [vmem:[#allocation5 + $0x148] sm:$0xf0]  ;;  %v2816_v2 = vld [vmem:[#allocation5 + $0x1c4] sm:$0xf]  ;;  %v2798_v6 = vld [vmem:[#allocation5 + $0x134] sm:$0xf]  ;;  %v2007_v11 = vor.u32 %v2782_v62, %v2004_v1 }
  0x49   :  { %956 = vmatpush.bf16.msrb.mxu2 %v2323_v34  ;;  %v2228_v34 = vld [vmem:[#allocation5 + $0x278] sm:$0xf0]  ;;  %v2079_v0 = vor.u32 %v2800_v56, %v2076_v57  ;;  %v2140_v3 = vld [vmem:[#allocation5 + $0x1c8] sm:$0xf0]  ;;  %v2832_v9 = vld [vmem:[#allocation5 + $0x244] sm:$0xf] }
  0x4a   :  { %968 = vmatpush.bf16.msrb.mxu3 %v1951_v40  ;;  %v1919_v40 = vor.u32 %v2760_v30, %v1916_v31  ;;  %v2231_v45 = vor.u32 %v2838_v33, %v2228_v34  ;;  %v2068_v7 = vld [vmem:[#allocation5 + $0x138] sm:$0xf0]  ;;  %v2204_v10 = vld [vmem:[#allocation5 + $0x248] sm:$0xf0]  ;;  %v2780_v12 = vld [vmem:[#allocation5 + $0xa4] sm:$0xf]  ;;  %v2143_v14 = vor.u32 %v2816_v2, %v2140_v3 }
  0x4b   :  { %931 = vmatpush.bf16.msrb.mxu0 %v2187_v43  ;;  %v2802_v43 = vld [vmem:[#allocation5 + $0x154] sm:$0xf]  ;;  %v2060_v20 = vld [vmem:[#allocation5 + $0x128] sm:$0xf0]  ;;  %v1988_v28 = vld [vmem:[#allocation5 + $0x98] sm:$0xf0] }
  0x4c   :  { %944 = vmatpush.bf16.msrb.mxu1 %v2251_v44  ;;  %v2084_v44 = vld [vmem:[#allocation5 + $0x158] sm:$0xf0]  ;;  %v2814_v17 = vld [vmem:[#allocation5 + $0x1b4] sm:$0xf]  ;;  %v2812_v30 = vld [vmem:[#allocation5 + $0x1a4] sm:$0xf] }
  0x4d   :  { %957 = vmatpush.bf16.msrb.mxu2 %v2315_v46  ;;  %v2836_v46 = vld [vmem:[#allocation5 + $0x264] sm:$0xf]  ;;  %v2087_v51 = vor.u32 %v2802_v43, %v2084_v44  ;;  %v2830_v21 = vld [vmem:[#allocation5 + $0x234] sm:$0xf]  ;;  %v2124_v31 = vld [vmem:[#allocation5 + $0x1a8] sm:$0xf0] }
  0x4e   :  { %969 = vmatpush.bf16.msrb.mxu3 %v1943_v52  ;;  %v2012_v52 = vld [vmem:[#allocation5 + $0xc8] sm:$0xf0]  ;;  %v2794_v33 = vld [vmem:[#allocation5 + $0x114] sm:$0xf]  ;;  %v2052_v34 = vld [vmem:[#allocation5 + $0x118] sm:$0xf0]  ;;  %v2127_v42 = vor.u32 %v2812_v30, %v2124_v31 }
  0x4f   :  { %932 = vmatpush.bf16.msrb.mxu0 %v2179_v58  ;;  %v2223_v58 = vor.u32 %v2836_v46, %v2220_v47  ;;  %v2015_v61 = vor.u32 %v2784_v49, %v2012_v52  ;;  %v2828_v36 = vld [vmem:[#allocation5 + $0x224] sm:$0xf]  ;;  %v2055_v43 = vor.u32 %v2794_v33, %v2052_v34  ;;  %v2044_v44 = vld [vmem:[#allocation5 + $0x108] sm:$0xf0]  ;;  %v2116_v46 = vld [vmem:[#allocation5 + $0x198] sm:$0xf0] }
  0x50   :  { %945 = vmatpush.bf16.msrb.mxu1 %v2243_v59  ;;  %v2834_v59 = vld [vmem:[#allocation5 + $0x254] sm:$0xf]  ;;  %v2776_v39 = vld [vmem:[#allocation5 + $0x84] sm:$0xf]  ;;  %v2348_v2 = vld [vmem:[#allocation5 + $0x368] sm:$0xf0] }
  0x51   :  { %958 = vmatpush.bf16.msrb.mxu2 %v2307_v63  ;;  %v2151_v63 = vor.u32 %v2818_v53, %v2148_v55  ;;  %v2792_v41 = vld [vmem:[#allocation5 + $0x104] sm:$0xf]  ;;  %v2854_v47 = vld [vmem:[#allocation5 + $0x2f4] sm:$0xf]  ;;  %v2180_v53 = vld [vmem:[#allocation5 + $0x218] sm:$0xf0] }
  0x52   :  { %970 = vmatpush.bf16.msrb.mxu3 %v1935_v8  ;;  %v2215_v8 = vor.u32 %v2834_v59, %v2212_v60  ;;  %v2870_v49 = vld [vmem:[#allocation5 + $0x374] sm:$0xf]  ;;  %v2047_v57 = vor.u32 %v2792_v41, %v2044_v44  ;;  %v2808_v59 = vld [vmem:[#allocation5 + $0x184] sm:$0xf]  ;;  %v2108_v60 = vld [vmem:[#allocation5 + $0x188] sm:$0xf0] }
  0x53   :  { %933 = vmatpush.bf16.msrb.mxu0 %v2171_v15  ;;  %v2071_v15 = vor.u32 %v2798_v6, %v2068_v7  ;;  %v2826_v52 = vld [vmem:[#allocation5 + $0x214] sm:$0xf]  ;;  %v2852_v62 = vld [vmem:[#allocation5 + $0x2e4] sm:$0xf]  ;;  %v2172_v6 = vld [vmem:[#allocation5 + $0x208] sm:$0xf0]  ;;  %v2111_v7 = vor.u32 %v2808_v59, %v2108_v60 }
  0x54   :  { %946 = vmatpush.bf16.msrb.mxu1 %v2235_v16  ;;  %v1996_v16 = vld [vmem:[#allocation5 + $0xa8] sm:$0xf0]  ;;  %v2183_v1 = vor.u32 %v2826_v52, %v2180_v53  ;;  %v2824_v3 = vld [vmem:[#allocation5 + $0x204] sm:$0xf]  ;;  %s1900_s13 = sshll.u32 %s3215_s4, 4  ;;  %s1901_s13 = int_to_ptr.hbm [resolvable:$true] %s1900_s13 }
  0x55   :  { %959 = vmatpush.bf16.msrb.mxu2 %v2299_v18  ;;  %v2132_v18 = vld [vmem:[#allocation5 + $0x1b8] sm:$0xf0]  ;;  %v1999_v23 = vor.u32 %v2780_v12, %v1996_v16  ;;  %v2175_v12 = vor.u32 %v2824_v3, %v2172_v6  ;;  %v2252_v30 = vld [vmem:[#allocation5 + $0x2a8] sm:$0xf0]  ;;  %v2860_v31 = vld [vmem:[#allocation5 + $0x324] sm:$0xf] }
  0x56   :  { %971 = vmatpush.bf16.msrb.mxu3 %v1927_v24  ;;  %934 = vmatmul.bf16.vlgmr.msrb.gmra.mxu0 %v3083_v27  ;;  %v2778_v24 = vld [vmem:[#allocation5 + $0x94] sm:$0xf]  ;;  %v2135_v25 = vor.u32 %v2814_v17, %v2132_v18  ;;  %v2848_v18 = vld [vmem:[#allocation5 + $0x2c4] sm:$0xf]  ;;  %v2236_v41 = vld [vmem:[#allocation5 + $0x288] sm:$0xf0] }
  0x57   :  { %978 = vmatpush.bf16.msra.mxu0 %v2039_v19  ;;  %947 = vmatmul.bf16.vlgmr.msrb.gmra.mxu1 %v3085_v29  ;;  %v2796_v19 = vld [vmem:[#allocation5 + $0x124] sm:$0xf] }
  0x58   :  { %991 = vmatpush.bf16.msra.mxu1 %v2103_v22  ;;  %960 = vmatmul.bf16.vlgmr.msrb.gmra.mxu2 %v3087_v32  ;;  %v2196_v22 = vld [vmem:[#allocation5 + $0x238] sm:$0xf0]  ;;  %v2063_v26 = vor.u32 %v2796_v19, %v2060_v20  ;;  %v2268_v19 = vld [vmem:[#allocation5 + $0x2c8] sm:$0xf0]  ;;  %v2864_v20 = vld [vmem:[#allocation5 + $0x344] sm:$0xf] }
  0x59   :  { %1004 = vmatpush.bf16.msra.mxu2 %v2167_v37  ;;  %v2188_v37 = vld [vmem:[#allocation5 + $0x228] sm:$0xf0] }
  0x5a   :  { %972 = vmatpush.bf16.msrb.mxu3 %v1919_v40  ;;  %v1980_v40 = vld [vmem:[#allocation5 + $0x88] sm:$0xf0] }
  0x5b   :  { %979 = vmatpush.bf16.msra.mxu0 %v2031_v35  ;;  %v2199_v35 = vor.u32 %v2830_v21, %v2196_v22  ;;  %v1983_v55 = vor.u32 %v2776_v39, %v1980_v40  ;;  %v2271_v21 = vor.u32 %v2848_v18, %v2268_v19  ;;  %v2846_v22 = vld [vmem:[#allocation5 + $0x2b4] sm:$0xf]  ;;  %v2840_v40 = vld [vmem:[#allocation5 + $0x284] sm:$0xf] }
  0x5c   :  { %992 = vmatpush.bf16.msra.mxu1 %v2095_v38  ;;  %v1991_v38 = vor.u32 %v2778_v24, %v1988_v28  ;;  %v2324_v24 = vld [vmem:[#allocation5 + $0x338] sm:$0xf0]  ;;  %v2844_v28 = vld [vmem:[#allocation5 + $0x2a4] sm:$0xf]  ;;  %v2239_v44 = vor.u32 %v2840_v40, %v2236_v41 }
  0x5d   :  { %1005 = vmatpush.bf16.msra.mxu2 %v2159_v50  ;;  %973 = vmatmul.bf16.vlgmr.msrb.gmra.mxu3 %v3074_v4  ;;  %v2207_v4 = vor.u32 %v2832_v9, %v2204_v10  ;;  %v2191_v50 = vor.u32 %v2828_v36, %v2188_v37  ;;  %v2850_v10 = vld [vmem:[#allocation5 + $0x2d4] sm:$0xf]  ;;  %v2255_v33 = vor.u32 %v2844_v28, %v2252_v30  ;;  %v2308_v37 = vld [vmem:[#allocation5 + $0x318] sm:$0xf0] }
  0x5e   :  { %1017 = vmatpush.bf16.msra.mxu3 %v2231_v45  ;;  %v2810_v45 = vld [vmem:[#allocation5 + $0x194] sm:$0xf] }
  0x5f   :  { %980 = vmatpush.bf16.msra.mxu0 %v2023_v48  ;;  %v2292_v48 = vld [vmem:[#allocation5 + $0x2f8] sm:$0xf0]  ;;  %v2119_v56 = vor.u32 %v2810_v45, %v2116_v46  ;;  %v2858_v36 = vld [vmem:[#allocation5 + $0x314] sm:$0xf] }
  0x60   :  { %993 = vmatpush.bf16.msra.mxu1 %v2087_v51  ;;  %v2356_v51 = vld [vmem:[#allocation5 + $0x378] sm:$0xf0]  ;;  %v2311_v39 = vor.u32 %v2858_v36, %v2308_v37 }
  0x61   :  { %1006 = vmatpush.bf16.msra.mxu2 %v2151_v63  ;;  %v2284_v63 = vld [vmem:[#allocation5 + $0x2e8] sm:$0xf0] }
  0x62   :  { %1018 = vmatpush.bf16.msra.mxu3 %v2223_v58  ;;  %v2295_v58 = vor.u32 %v2854_v47, %v2292_v48 }
  0x63   :  { %981 = vmatpush.bf16.msra.mxu0 %v2015_v61  ;;  %v2359_v61 = vor.u32 %v2870_v49, %v2356_v51 }
  0x64   :  { %994 = vmatpush.bf16.msra.mxu1 %v2079_v0  ;;  %v2868_v0 = vld [vmem:[#allocation5 + $0x364] sm:$0xf] }
  0x65   :  { %1007 = vmatpush.bf16.msra.mxu2 %v2143_v14  ;;  %v2351_v9 = vor.u32 %v2868_v0, %v2348_v2  ;;  %v2866_v14 = vld [vmem:[#allocation5 + $0x354] sm:$0xf]  ;;  %v3032_v2 = vmov 8.0  }
  0x66   :  { %1019 = vmatpush.bf16.msra.mxu3 %v2215_v8  ;;  %v2287_v8 = vor.u32 %v2852_v62, %v2284_v63  ;;  %2882 = vrcp.f32 %v3032_v2  ;;  %v2709_v2 = vld [vmem:[#allocation7 + $0x240] sm:$0xf0] }
  0x67   :  { %982 = vmatpush.bf16.msra.mxu0 %v2007_v11  ;;  %v2276_v11 = vld [vmem:[#allocation5 + $0x2d8] sm:$0xf0] }
  0x68   :  { %995 = vmatpush.bf16.msra.mxu1 %v2071_v15  ;;  %v2340_v15 = vld [vmem:[#allocation5 + $0x358] sm:$0xf0]  ;;  %v2279_v16 = vor.u32 %v2850_v10, %v2276_v11 }
  0x69   :  { %1008 = vmatpush.bf16.msra.mxu2 %v2135_v25  ;;  %v2343_v17 = vor.u32 %v2866_v14, %v2340_v15 }
  0x6a   :  { %1020 = vmatpush.bf16.msra.mxu3 %v2207_v4  ;;  %v2332_v4 = vld [vmem:[#allocation5 + $0x348] sm:$0xf0] }
  0x6b   :  { %983 = vmatpush.bf16.msra.mxu0 %v1999_v23  ;;  %v2260_v23 = vld [vmem:[#allocation5 + $0x2b8] sm:$0xf0] }
  0x6c   :  { %996 = vmatpush.bf16.msra.mxu1 %v2063_v26  ;;  %v2263_v25 = vor.u32 %v2846_v22, %v2260_v23 }
  0x6d   :  { %1009 = vmatpush.bf16.msra.mxu2 %v2127_v42  ;;  %v2856_v42 = vld [vmem:[#allocation5 + $0x304] sm:$0xf] }
  0x6e   :  { %1021 = vmatpush.bf16.msra.mxu3 %v2199_v35  ;;  %v2842_v35 = vld [vmem:[#allocation5 + $0x294] sm:$0xf] }
  0x6f   :  { %984 = vmatpush.bf16.msra.mxu0 %v1991_v38 }
  0x70   :  { %997 = vmatpush.bf16.msra.mxu1 %v2055_v43  ;;  %v2300_v43 = vld [vmem:[#allocation5 + $0x308] sm:$0xf0] }
  0x71   :  { %1010 = vmatpush.bf16.msra.mxu2 %v2119_v56  ;;  %v2303_v45 = vor.u32 %v2856_v42, %v2300_v43 }
  0x72   :  { %1022 = vmatpush.bf16.msra.mxu3 %v2191_v50 }
  0x73   :  { %985 = vmatpush.bf16.msra.mxu0 %v1983_v55 }
  0x74   :  { %998 = vmatpush.bf16.msra.mxu1 %v2047_v57 }
  0x75   :  { %1011 = vmatpush.bf16.msra.mxu2 %v2111_v7 }
  0x76   :  { %1023 = vmatpush.bf16.msra.mxu3 %v2183_v1  ;;  %986 = vmatmul.bf16.vlgmr.msra.gmra.mxu0 %v3076_v5  ;;  %v2335_v5 = vor.u32 %v2864_v20, %v2332_v4 }
  0x77   :  { %1030 = vmatpush.bf16.msrb.mxu0 %v2295_v58  ;;  %999 = vmatmul.bf16.vlgmr.msra.gmra.mxu1 %v3071_v54  ;;  %v2862_v54 = vld [vmem:[#allocation5 + $0x334] sm:$0xf] }
  0x78   :  { %1043 = vmatpush.bf16.msrb.mxu1 %v2359_v61  ;;  %1012 = vmatmul.bf16.vlgmr.msra.gmra.mxu2 %v3078_v13  ;;  %v2327_v26 = vor.u32 %v2862_v54, %v2324_v24  ;;  %v2316_v13 = vld [vmem:[#allocation5 + $0x328] sm:$0xf0] }
  0x79   :  { %v2319_v34 = vor.u32 %v2860_v31, %v2316_v13 }
  0x7a   :  { %1024 = vmatpush.bf16.msra.mxu3 %v2175_v12 }
  0x7b   :  { %1031 = vmatpush.bf16.msrb.mxu0 %v2287_v8  ;;  %v2883_v8 = vpop.eup %2882 }
  0x7c   :  { %1044 = vmatpush.bf16.msrb.mxu1 %v2351_v9  ;;  %v1072_v11 = vmul.f32 8.0, %v2883_v8  ;;  %vm1076_vm0 = vweird.f32 %v2883_v8 }
  0x7d   :  { %1025 = vmatmul.bf16.vlgmr.msra.gmra.mxu3 %v3083_v27  ;;  %v2244_v27 = vld [vmem:[#allocation5 + $0x298] sm:$0xf0] }
  0x7e   :  { %v2247_v38 = vor.u32 %v2842_v35, %v2244_v27 }
  0x7f   :  { %1032 = vmatpush.bf16.msrb.mxu0 %v2279_v16 }
  0x80   :  { %1045 = vmatpush.bf16.msrb.mxu1 %v2343_v17  ;;  %v1073_v17 = vsub.f32 1.0, %v1072_v11 }
  0x82   :  { %v1074_v20 = vmul.f32 %v2883_v8, %v1073_v17  ;;  %v2402_v17 = vld [vmem:[#allocation7 + $0xc8] sm:$0xf] }
  0x83   :  { %1033 = vmatpush.bf16.msrb.mxu0 %v2271_v21 }
  0x84   :  { %1046 = vmatpush.bf16.msrb.mxu1 %v2335_v5  ;;  %v1075_v54 = vadd.f32 %v2883_v8, %v1074_v20 }
  0x86   :  { %v3105_v28 = vsel %vm1076_vm0, %v2883_v8, %v1075_v54  ;;  %v2412_v8 = vld [vmem:[#allocation7 + $0x104] sm:$0xf0]  ;;  %v2404_v54 = vld [vmem:[#allocation7 + $0xdc] sm:$0xf0] }
  0x87   :  { %1034 = vmatpush.bf16.msrb.mxu0 %v2263_v25 }
  0x88   :  { %1047 = vmatpush.bf16.msrb.mxu1 %v2327_v26 }
  0x8b   :  { %1035 = vmatpush.bf16.msrb.mxu0 %v2255_v33 }
  0x8c   :  { %1048 = vmatpush.bf16.msrb.mxu1 %v2319_v34 }
  0x8f   :  { %1036 = vmatpush.bf16.msrb.mxu0 %v2247_v38 }
  0x90   :  { %1049 = vmatpush.bf16.msrb.mxu1 %v2311_v39 }
  0x93   :  { %1037 = vmatpush.bf16.msrb.mxu0 %v2239_v44  ;;  %v2418_v44 = vld [vmem:[#allocation7 + $0x118] sm:$0xf] }
  0x94   :  { %1050 = vmatpush.bf16.msrb.mxu1 %v2303_v45  ;;  %v2695_v45 = vld [vmem:[#allocation7 + $0x128] sm:$0xf0] }
  0x96   :  { %1038 = vmatmul.bf16.vlgmr.msrb.gmra.mxu0 %v3085_v29 }
  0x97   :  { %1051 = vmatmul.bf16.vlgmr.msrb.gmra.mxu1 %v3087_v32 }
  0xb3   :  { %v883_v46 = vpop.f32.mrf.mxu0 }
  0xb4   :  { %v896_v47 = vpop.f32.mrf.mxu1 }
  0xb5   :  { %v897_v48 = vadd.f32 %v896_v47, %v883_v46  ;;  %v2482_v46 = vld [vmem:[#allocation7 + $0x258] sm:$0xf] }
  0xbb   :  { %v909_v49 = vpop.f32.mrf.mxu2  ;;  %v885_v51 = vpop.f32.mrf.mxu0 }
  0xbc   :  { %v910_v50 = vadd.f32 %v909_v49, %v897_v48  ;;  %v898_v52 = vpop.f32.mrf.mxu1  ;;  %v2419_v48 = vor.u32 %v2695_v45, %v2418_v44  ;;  %v2711_v49 = vld [vmem:[#allocation7 + $0x268] sm:$0xf0]  ;;  %v2420_v51 = vld [vmem:[#allocation7 + $0x12c] sm:$0xf0]  ;;  %v2460_v44 = vld [vmem:[#allocation7 + $0x1f4] sm:$0xf0] }
  0xbd   :  { %v2483_v52 = vor.u32 %v2711_v49, %v2482_v46 }
  0xbe   :  { %1317 = vmatpush.bf16.msrb.mxu2 %v2419_v48 }
  0xbf   :  { %1330 = vmatpush.bf16.msrb.mxu3 %v2483_v52  ;;  %v2450_v52 = vld [vmem:[#allocation7 + $0x1b8] sm:$0xf] }
  0xc0   :  { %v922_v53 = vpop.f32.mrf.mxu3 }
  0xc1   :  { %v923_v56 = vadd.f32 %v922_v53, %v910_v50  ;;  %v2694_v50 = vld [vmem:[#allocation7 + $0x11c] sm:$0xf] }
  0xc2   :  { %v2423_v53 = vor.u32 %v2694_v50, %v2420_v51  ;;  %v2386_v50 = vld [vmem:[#allocation7 + $0x78] sm:$0xf]  ;;  %v2687_v51 = vld [vmem:[#allocation7 + $0x88] sm:$0xf0] }
  0xc3   :  { %v911_v55 = vpop.f32.mrf.mxu2 }
  0xc4   :  { %v2710_v55 = vld [vmem:[#allocation7 + $0x25c] sm:$0xf]  ;;  %1343 = vmatpush.bf16.msra.mxu0 %v2423_v53 }
  0xc8   :  { %v924_v57 = vpop.f32.mrf.mxu3 }
  0xd3   :  { %v935_v58 = vpop.f32.mrf.mxu0 }
  0xd4   :  { %v948_v59 = vpop.f32.mrf.mxu1  ;;  %v936_v63 = vadd.f32 %v935_v58, %v923_v56  ;;  %v2484_v56 = vld [vmem:[#allocation7 + $0x26c] sm:$0xf0] }
  0xd6   :  { %v949_v0 = vadd.f32 %v948_v59, %v936_v63  ;;  %v2474_v63 = vld [vmem:[#allocation7 + $0x230] sm:$0xf] }
  0xdb   :  { %v961_v60 = vpop.f32.mrf.mxu2  ;;  %v937_v61 = vpop.f32.mrf.mxu0 }
  0xdc   :  { %v950_v62 = vpop.f32.mrf.mxu1  ;;  %v3099_v1 = vadd.f32 %v961_v60, %v949_v0  ;;  %v2487_v60 = vor.u32 %v2710_v55, %v2484_v56  ;;  %v2410_v61 = vld [vmem:[#allocation7 + $0xf0] sm:$0xf]  ;;  %v2387_v56 = vor.u32 %v2687_v51, %v2386_v50 }
  0xdd   :  { %v2693_v62 = vld [vmem:[#allocation7 + $0x100] sm:$0xf0] }
  0xde   :  { %v1059_v6 = vrot.slane %v3099_v1, 4  ;;  %v1080_v7 = vmul.f32 %v3099_v1, %v3099_v1  ;;  %1356 = vmatpush.bf16.msra.mxu1 %v2487_v60  ;;  %v2388_v60 = vld [vmem:[#allocation7 + $0x8c] sm:$0xf0] }
  0xe0   :  { %v974_v29 = vpop.f32.mrf.mxu3  ;;  %v1060_v9 = vadd.f32 %v1059_v6, %v3099_v1  ;;  %v1082_v10 = vrot.slane %v1080_v7, 4 }
  0xe2   :  { %v1061_v15 = vrot.slane %v1060_v9, 2  ;;  %v1083_v16 = vadd.f32 %v1082_v10, %v1080_v7  ;;  %v2475_v7 = vor.u32 %v2709_v2, %v2474_v63  ;;  %v2476_v10 = vld [vmem:[#allocation7 + $0x244] sm:$0xf0]  ;;  %v2702_v63 = vld [vmem:[#allocation7 + $0x1bc] sm:$0xf] }
  0xe3   :  { %v963_v32 = vpop.f32.mrf.mxu2 }
  0xe4   :  { %v1062_v18 = vadd.f32 %v1061_v15, %v1060_v9  ;;  %v1084_v19 = vrot.slane %v1083_v16, 2  ;;  %v2411_v32 = vor.u32 %v2693_v62, %v2410_v61  ;;  %v2708_v9 = vld [vmem:[#allocation7 + $0x234] sm:$0xf]  ;;  %1331 = vmatpush.bf16.msrb.mxu3 %v2475_v7  ;;  %v2442_v7 = vld [vmem:[#allocation7 + $0x190] sm:$0xf] }
  0xe6   :  { %v1063_v5 = vrot.slane %v1062_v18, 1  ;;  %v1085_v22 = vadd.f32 %v1084_v19, %v1083_v16  ;;  %1318 = vmatpush.bf16.msrb.mxu2 %v2411_v32  ;;  %v2479_v16 = vor.u32 %v2708_v9, %v2476_v10  ;;  %v2466_v19 = vld [vmem:[#allocation7 + $0x208] sm:$0xf]  ;;  %v2701_v10 = vld [vmem:[#allocation7 + $0x1a0] sm:$0xf0] }
  0xe8   :  { %v976_v3 = vpop.f32.mrf.mxu3  ;;  %v1064_v25 = vadd.f32 %v1063_v5, %v1062_v18  ;;  %v1086_v26 = vrot.slane %v1085_v22, 1  ;;  %v2691_v18 = vld [vmem:[#allocation7 + $0xd8] sm:$0xf0]  ;;  %1357 = vmatpush.bf16.msra.mxu1 %v2479_v16  ;;  %v2444_v16 = vld [vmem:[#allocation7 + $0x1a4] sm:$0xf0] }
  0xe9   :  { %v2692_v3 = vld [vmem:[#allocation7 + $0xf4] sm:$0xf]  ;;  %v2707_v5 = vld [vmem:[#allocation7 + $0x218] sm:$0xf0] }
  0xea   :  { %v3108_v31 = vmul.f32 %v3105_v28, %v1064_v25  ;;  %v1087_v13 = vadd.f32 %v1086_v26, %v1085_v22  ;;  %v2415_v15 = vor.u32 %v2692_v3, %v2412_v8  ;;  %v2690_v22 = vld [vmem:[#allocation7 + $0xcc] sm:$0xf]  ;;  %v2468_v25 = vld [vmem:[#allocation7 + $0x21c] sm:$0xf0]  ;;  %v2378_v3 = vld [vmem:[#allocation7 + $0x50] sm:$0xf] }
  0xec   :  { %v1094_v27 = vmul.f32 %v1087_v13, %v3105_v28  ;;  %v1096_v36 = vmul.f32 %v3108_v31, %v3108_v31  ;;  %1344 = vmatpush.bf16.msra.mxu0 %v2415_v15  ;;  %v2407_v13 = vor.u32 %v2690_v22, %v2404_v54  ;;  %v2700_v15 = vld [vmem:[#allocation7 + $0x194] sm:$0xf]  ;;  %v2434_v22 = vld [vmem:[#allocation7 + $0x168] sm:$0xf]  ;;  %v2682_v54 = vld [vmem:[#allocation7 + $0x2c] sm:$0xf] }
  0xee   :  { %v1098_v38 = vsub.f32 %v1094_v27, %v1096_v36  ;;  %v2458_v27 = vld [vmem:[#allocation7 + $0x1e0] sm:$0xf] }
  0xf0   :  { %v1100_v41 = vmax.f32 %v1098_v38, 0.0  ;;  %1345 = vmatpush.bf16.msra.mxu0 %v2407_v13 }
  0xf2   :  { %v3115_v57 = vadd.f32 1e-05, %v1100_v41 }
  0xf3   :  { %v987_v12 = vpop.f32.mrf.mxu0 }
  0xf4   :  { %v1000_v14 = vpop.f32.mrf.mxu1  ;;  %v988_v30 = vadd.f32 %v987_v12, %v974_v29  ;;  %2884 = vrsqrt.f32 %v3115_v57  ;;  %vm1110_vm5 = vweird.f32 %v3115_v57 }
  0xf6   :  { %v1001_v34 = vadd.f32 %v1000_v14, %v988_v30 }
  0xfa   :  { %v3128_v2 = vpop.eup %2884 }
  0xfb   :  { %v989_v4 = vpop.f32.mrf.mxu0  ;;  %v1013_v23 = vpop.f32.mrf.mxu2  ;;  %vm1111_vm2 = vweird.f32 %v3128_v2 }
  0xfc   :  { %v1002_v21 = vpop.f32.mrf.mxu1  ;;  %v1014_v37 = vadd.f32 %v1013_v23, %v1001_v34  ;;  %v2467_v23 = vor.u32 %v2707_v5, %v2466_v19  ;;  %v2394_v34 = vld [vmem:[#allocation7 + $0xa0] sm:$0xf]  ;;  %v2447_v19 = vor.u32 %v2700_v15, %v2444_v16  ;;  %vm1112_vm7 = vmor %vm1110_vm5, %vm1111_vm2 }
  0xfd   :  { %v2403_v21 = vor.u32 %v2691_v18, %v2402_v17 }
  0xfe   :  { %1332 = vmatpush.bf16.msrb.mxu3 %v2467_v23  ;;  %v2699_v23 = vld [vmem:[#allocation7 + $0x178] sm:$0xf0] }
  0xff   :  { %1319 = vmatpush.bf16.msrb.mxu2 %v2403_v21  ;;  %v1105_v21 = vmul.f32 %v3128_v2, %v3115_v57 }
 0x100   :  { %v1026_v24 = vpop.f32.mrf.mxu3 }
 0x101   :  { %v1027_v39 = vadd.f32 %v1026_v24, %v1014_v37  ;;  %v2706_v24 = vld [vmem:[#allocation7 + $0x20c] sm:$0xf] }
 0x103   :  { %v1015_v33 = vpop.f32.mrf.mxu2 }
 0x104   :  { %v2471_v33 = vor.u32 %v2706_v24, %v2468_v25  ;;  %v2435_v24 = vor.u32 %v2699_v23, %v2434_v22  ;;  %v2372_v25 = vld [vmem:[#allocation7 + $0x3c] sm:$0xf0]  ;;  %v2743_v23 = vld [vmem:[#allocation7 + $0x270] sm:$0xf0] }
 0x105   :  { %v2375_v13 = vor.u32 %v2682_v54, %v2372_v25  ;;  %v2610_v22 = vld [vmem:[#allocation7 + $0x260] sm:$0xf]  ;;  %v2726_v54 = vld [vmem:[#allocation7 + $0x124] sm:$0xf] }
 0x106   :  { %1358 = vmatpush.bf16.msra.mxu1 %v2471_v33 }
 0x108   :  { %v1028_v35 = vpop.f32.mrf.mxu3 }
 0x109   :  { %v2689_v35 = vld [vmem:[#allocation7 + $0xb0] sm:$0xf0] }
 0x10a   :  { %v2395_v38 = vor.u32 %v2689_v35, %v2394_v34  ;;  %v2362_v34 = vld [vmem:[#allocation7] sm:$0xf]  ;;  %v2681_v35 = vld [vmem:[#allocation7 + $0x10] sm:$0xf0] }
 0x10c   :  { %1320 = vmatpush.bf16.msrb.mxu2 %v2395_v38  ;;  %v2680_v38 = vld [vmem:[#allocation7 + $0x4] sm:$0xf] }
 0x110   :  { %1321 = vmatpush.bf16.msrb.mxu2 %v2387_v56 }
 0x113   :  { %v1039_v40 = vpop.f32.mrf.mxu0 }
 0x114   :  { %v1040_v42 = vadd.f32 %v1039_v40, %v1027_v39  ;;  %v1052_v43 = vpop.f32.mrf.mxu1  ;;  %v2705_v39 = vld [vmem:[#allocation7 + $0x1f0] sm:$0xf0]  ;;  %v2688_v40 = vld [vmem:[#allocation7 + $0xa4] sm:$0xf] }
 0x115   :  { %v2459_v41 = vor.u32 %v2705_v39, %v2458_v27  ;;  %v2426_v27 = vld [vmem:[#allocation7 + $0x140] sm:$0xf]  ;;  %v2364_v39 = vld [vmem:[#allocation7 + $0x14] sm:$0xf0] }
 0x116   :  { %v3113_v47 = vadd.f32 %v1052_v43, %v1040_v42  ;;  %v2396_v42 = vld [vmem:[#allocation7 + $0xb4] sm:$0xf0]  ;;  %v2704_v43 = vld [vmem:[#allocation7 + $0x1e4] sm:$0xf] }
 0x117   :  { %v2399_v48 = vor.u32 %v2688_v40, %v2396_v42  ;;  %v2463_v49 = vor.u32 %v2704_v43, %v2460_v44  ;;  %1333 = vmatpush.bf16.msrb.mxu3 %v2459_v41  ;;  %v1106_v40 = vmul.f32 %v3128_v2, %v1105_v21  ;;  %v2696_v42 = vld [vmem:[#allocation7 + $0x144] sm:$0xf]  ;;  %v2428_v43 = vld [vmem:[#allocation7 + $0x154] sm:$0xf0]  ;;  %v2367_v44 = vor.u32 %v2680_v38, %v2364_v39  ;;  %v2727_v21 = vld [vmem:[#allocation7 + $0x130] sm:$0xf0] }
 0x118   :  { %v1065_v58 = vrot.slane %v3113_v47, 4  ;;  %v1081_v59 = vmul.f32 %v3113_v47, %v3113_v47 }
 0x119   :  { %1346 = vmatpush.bf16.msra.mxu0 %v2399_v48  ;;  %1359 = vmatpush.bf16.msra.mxu1 %v2463_v49  ;;  %v1107_v49 = vmul.f32 0.5, %v1106_v40  ;;  %v2538_v40 = vld [vmem:[#allocation7 + $0xf8] sm:$0xf] }
 0x11a   :  { %v1066_v29 = vadd.f32 %v1065_v58, %v3113_v47  ;;  %v1088_v0 = vrot.slane %v1081_v59, 4  ;;  %v2703_v58 = vld [vmem:[#allocation7 + $0x1c8] sm:$0xf0] }
 0x11b   :  { %v1041_v6 = vpop.f32.mrf.mxu0  ;;  %v2451_v61 = vor.u32 %v2703_v58, %v2450_v52  ;;  %v1108_v52 = vsub.f32 1.5, %v1107_v49  ;;  %v2602_v49 = vld [vmem:[#allocation7 + $0x238] sm:$0xf] }
 0x11c   :  { %v1067_v11 = vrot.slane %v1066_v29, 2  ;;  %v1089_v12 = vadd.f32 %v1088_v0, %v1081_v59  ;;  %v1054_v14 = vpop.f32.mrf.mxu1  ;;  %v2686_v59 = vld [vmem:[#allocation7 + $0x7c] sm:$0xf]  ;;  %v2685_v6 = vld [vmem:[#allocation7 + $0x60] sm:$0xf0] }
 0x11d   :  { %v2391_v62 = vor.u32 %v2686_v59, %v2388_v60  ;;  %1334 = vmatpush.bf16.msrb.mxu3 %v2451_v61  ;;  %v2379_v9 = vor.u32 %v2685_v6, %v2378_v3  ;;  %v2380_v14 = vld [vmem:[#allocation7 + $0x64] sm:$0xf0]  ;;  %v1109_v56 = vmul.f32 %v3128_v2, %v1108_v52 }
 0x11e   :  { %v1068_v20 = vadd.f32 %v1067_v11, %v1066_v29  ;;  %v1090_v4 = vrot.slane %v1089_v12, 2  ;;  %v2452_v29 = vld [vmem:[#allocation7 + $0x1cc] sm:$0xf0]  ;;  %v2684_v11 = vld [vmem:[#allocation7 + $0x54] sm:$0xf] }
 0x11f   :  { %v2455_v32 = vor.u32 %v2702_v63, %v2452_v29  ;;  %1347 = vmatpush.bf16.msra.mxu0 %v2391_v62  ;;  %1322 = vmatpush.bf16.msrb.mxu2 %v2379_v9  ;;  %v2383_v18 = vor.u32 %v2684_v11, %v2380_v14  ;;  %v1056_v60 = vld [vmem:[#allocation8] ss:$8 sm:$0x3]  ;;  %v1113_v62 = vsel %vm1112_vm7, %v3128_v2, %v1109_v56  ;;  %v2540_v56 = vld [vmem:[#allocation7 + $0x10c] sm:$0xf0] }
 0x120   :  { %v1069_v26 = vrot.slane %v1068_v20, 1  ;;  %v1091_v30 = vadd.f32 %v1090_v4, %v1089_v12  ;;  %v2443_v12 = vor.u32 %v2701_v10, %v2442_v7  ;;  %v2683_v4 = vld [vmem:[#allocation7 + $0x38] sm:$0xf0]  ;;  %v1058_v7 = vld [vmem:[#allocation8 + $0x1] ss:$8 sm:$0x3] }
 0x121   :  { %1360 = vmatpush.bf16.msra.mxu1 %v2455_v32 }
 0x122   :  { %v1070_v36 = vadd.f32 %v1069_v26, %v1068_v20  ;;  %v1092_v37 = vrot.slane %v1091_v30, 1  ;;  %v2370_v20 = vld [vmem:[#allocation7 + $0x28] sm:$0xf]  ;;  %1335 = vmatpush.bf16.msrb.mxu3 %v2443_v12  ;;  %v2698_v26 = vld [vmem:[#allocation7 + $0x16c] sm:$0xf] }
 0x123   :  { %v2371_v5 = vor.u32 %v2683_v4, %v2370_v20  ;;  %1348 = vmatpush.bf16.msra.mxu0 %v2383_v18  ;;  %v2546_v4 = vld [vmem:[#allocation7 + $0x120] sm:$0xf] }
 0x124   :  { %v3123_v45 = vmul.f32 %v3105_v28, %v1070_v36  ;;  %v1093_v46 = vadd.f32 %v1092_v37, %v1091_v30  ;;  %v2436_v30 = vld [vmem:[#allocation7 + $0x17c] sm:$0xf0]  ;;  %v2363_v36 = vor.u32 %v2681_v35, %v2362_v34  ;;  %v2697_v37 = vld [vmem:[#allocation7 + $0x150] sm:$0xf0]  ;;  %v2742_v34 = vld [vmem:[#allocation7 + $0x264] sm:$0xf] }
 0x125   :  { %1361 = vmatpush.bf16.msra.mxu1 %v2447_v19  ;;  %v2439_v33 = vor.u32 %v2698_v26, %v2436_v30  ;;  %1323 = vmatpush.bf16.msrb.mxu2 %v2371_v5  ;;  %v2427_v41 = vor.u32 %v2697_v37, %v2426_v27  ;;  %v2547_v5 = vor.u32 %v2727_v21, %v2546_v4  ;;  %v2522_v21 = vld [vmem:[#allocation7 + $0xa8] sm:$0xf] }
 0x126   :  { %v1095_v53 = vmul.f32 %v1093_v46, %v3105_v28  ;;  %v1097_v55 = vmul.f32 %v3123_v45, %v3123_v45  ;;  %1336 = vmatpush.bf16.msrb.mxu3 %v2435_v24  ;;  %v2431_v46 = vor.u32 %v2696_v42, %v2428_v43 }
 0x127   :  { %1349 = vmatpush.bf16.msra.mxu0 %v2375_v13  ;;  %v2611_v13 = vor.u32 %v2743_v23, %v2610_v22  ;;  %v2586_v22 = vld [vmem:[#allocation7 + $0x1e8] sm:$0xf] }
 0x128   :  { %v1099_v0 = vsub.f32 %v1095_v53, %v1097_v55 }
 0x129   :  { %1362 = vmatpush.bf16.msra.mxu1 %v2439_v33  ;;  %1324 = vmatpush.bf16.msrb.mxu2 %v2363_v36  ;;  %v2548_v33 = vld [vmem:[#allocation7 + $0x134] sm:$0xf0] }
 0x12a   :  { %v1101_v8 = vmax.f32 %v1099_v0, 0.0  ;;  %1337 = vmatpush.bf16.msrb.mxu3 %v2427_v41  ;;  %v2551_v27 = vor.u32 %v2726_v54, %v2548_v33  ;;  %v2612_v36 = vld [vmem:[#allocation7 + $0x274] sm:$0xf0]  ;;  %v2725_v41 = vld [vmem:[#allocation7 + $0x108] sm:$0xf0] }
 0x12b   :  { %1350 = vmatpush.bf16.msra.mxu0 %v2367_v44  ;;  %v2615_v39 = vor.u32 %v2742_v34, %v2612_v36  ;;  %v2524_v34 = vld [vmem:[#allocation7 + $0xbc] sm:$0xf0] }
 0x12c   :  { %v1103_v17 = vadd.f32 1e-05, %v1101_v8  ;;  %v2588_v36 = vld [vmem:[#allocation7 + $0x1fc] sm:$0xf0] }
 0x12d   :  { %1363 = vmatpush.bf16.msra.mxu1 %v2431_v46  ;;  %1623 = vmatpush.bf16.msra.mxu2 %v2547_v5  ;;  %v2721_v5 = vld [vmem:[#allocation7 + $0xb8] sm:$0xf0] }
 0x12e   :  { %2886 = vrsqrt.f32 %v1103_v17  ;;  %vm1120_vm3 = vweird.f32 %v1103_v17  ;;  %1636 = vmatpush.bf16.msra.mxu3 %v2611_v13 }
 0x12f   :  { %1649 = vmatpush.bf16.msrb.mxu0 %v2551_v27  ;;  %v2736_v27 = vld [vmem:[#allocation7 + $0x1ec] sm:$0xf] }
 0x131   :  { %1662 = vmatpush.bf16.msrb.mxu1 %v2615_v39 }
 0x134   :  { %v2887_v48 = vpop.eup %2886 }
 0x135   :  { %v1115_v50 = vmul.f32 %v2887_v48, %v1103_v17  ;;  %vm1121_vm1 = vweird.f32 %v2887_v48 }
 0x136   :  { %vm1122_vm4 = vmor %vm1120_vm3, %vm1121_vm1 }
 0x137   :  { %v1116_v51 = vmul.f32 %v2887_v48, %v1115_v50  ;;  %v2741_v50 = vld [vmem:[#allocation7 + $0x248] sm:$0xf0] }
 0x139   :  { %v1117_v53 = vmul.f32 0.5, %v1116_v51 }
 0x13b   :  { %v1118_v55 = vsub.f32 1.5, %v1117_v53  ;;  %v2603_v53 = vor.u32 %v2741_v50, %v2602_v49  ;;  %v2735_v50 = vld [vmem:[#allocation7 + $0x1d0] sm:$0xf0] }
 0x13d   :  { %v1119_v58 = vmul.f32 %v2887_v48, %v1118_v55  ;;  %v2724_v55 = vld [vmem:[#allocation7 + $0xfc] sm:$0xf]  ;;  %1637 = vmatpush.bf16.msra.mxu3 %v2603_v53 }
 0x13f   :  { %v1123_v59 = vsel %vm1122_vm4, %v2887_v48, %v1119_v58  ;;  %v2539_v48 = vor.u32 %v2725_v41, %v2538_v40  ;;  %v2591_v40 = vor.u32 %v2736_v27, %v2588_v36  ;;  %v2492_v27 = vld [vmem:[#allocation7 + $0x1c] sm:$0xf0]  ;;  %v2728_v36 = vld [vmem:[#allocation7 + $0x14c] sm:$0xf] }
 0x140   :  { %v1126_v61 = vrot.slane %v1123_v59, 7 }
 0x141   :  { %1624 = vmatpush.bf16.msra.mxu2 %v2539_v48 }
 0x142   :  { %v1128_v63 = vsel %vm1127_vm6, %v1113_v62, %v1126_v61  ;;  %v2740_v61 = vld [vmem:[#allocation7 + $0x23c] sm:$0xf]  ;;  %v2604_v62 = vld [vmem:[#allocation7 + $0x24c] sm:$0xf0] }
 0x143   :  { %v1130_v29 = vmul.f32 %v1128_v63, %v1056_v60  ;;  %v2543_v60 = vor.u32 %v2724_v55, %v2540_v56 }
 0x145   :  { %v1133_v0 = vperm.slane %v1130_v29, 1  ;;  %v1132_v32 = vperm.slane %v1130_v29, 0  ;;  %1650 = vmatpush.bf16.msrb.mxu0 %v2543_v60 }
 0x147   :  { %v1137_v3 = vmul.f32 %v1133_v0, %v3123_v45  ;;  %v1136_v8 = vmul.f32 %v1132_v32, %v3108_v31  ;;  %v1145_v10 = vmul.f32 %v1133_v0, %v3113_v47  ;;  %v1144_v11 = vmul.f32 %v1132_v32, %v3099_v1  ;;  %v2530_v32 = vld [vmem:[#allocation7 + $0xd0] sm:$0xf] }
 0x148   :  { %v2607_v0 = vor.u32 %v2740_v61, %v2604_v62 }
 0x149   :  { %v1140_v6 = vrot.slane %v1137_v3, 7  ;;  %v2723_v3 = vld [vmem:[#allocation7 + $0xe0] sm:$0xf0] }
 0x14a   :  { %1663 = vmatpush.bf16.msrb.mxu1 %v2607_v0  ;;  %v2717_v0 = vld [vmem:[#allocation7 + $0x68] sm:$0xf0] }
 0x14b   :  { %v1141_v57 = vsel %vm1127_vm6, %v1136_v8, %v1140_v6  ;;  %v2531_v8 = vor.u32 %v2723_v3, %v2530_v32 }
 0x14c   :  { %v1143_v9 = vsub.f32 %v1058_v7, %v1141_v57  ;;  %v2594_v57 = vld [vmem:[#allocation7 + $0x210] sm:$0xf] }
 0x14d   :  { %1625 = vmatpush.bf16.msra.mxu2 %v2531_v8  ;;  %v2716_v8 = vld [vmem:[#allocation7 + $0x5c] sm:$0xf] }
 0x14e   :  { %v1147_v12 = vperm.slane %v1143_v9, 0  ;;  %v1148_v2 = vperm.slane %v1143_v9, 1  ;;  %v2739_v9 = vld [vmem:[#allocation7 + $0x220] sm:$0xf0] }
 0x150   :  { %v1151_v14 = vadd.f32 %v1147_v12, %v1144_v11  ;;  %v1152_v15 = vadd.f32 %v1148_v2, %v1145_v10 }
 0x152   :  { %v1153_v16 = vmax.f32 %v1151_v14, 0.0  ;;  %v1154_v17 = vmax.f32 %v1152_v15, 0.0  ;;  %v2595_v14 = vor.u32 %v2739_v9, %v2594_v57  ;;  %v2722_v15 = vld [vmem:[#allocation7 + $0xd4] sm:$0xf]  ;;  %v2508_v9 = vld [vmem:[#allocation7 + $0x6c] sm:$0xf0] }
 0x154   :  { %v1155_v18 = vpack.c.bf16 %v1153_v16, %v1153_v16  ;;  %v1156_v19 = vpack.c.bf16 %v1154_v17, %v1154_v17  ;;  %v2532_v16 = vld [vmem:[#allocation7 + $0xe4] sm:$0xf0]  ;;  %1638 = vmatpush.bf16.msra.mxu3 %v2595_v14 }
 0x156   :  { %1325 = vmatmul.bf16.vlgmr.msrb.gmra.mxu2 %v1155_v18  ;;  %1338 = vmatmul.bf16.vlgmr.msrb.gmra.mxu3 %v1156_v19 }
 0x157   :  { %1351 = vmatmul.bf16.vlgmr.msra.gmra.mxu0 %v1155_v18  ;;  %1364 = vmatmul.bf16.vlgmr.msra.gmra.mxu1 %v1156_v19  ;;  %v2535_v19 = vor.u32 %v2722_v15, %v2532_v16  ;;  %v2498_v15 = vld [vmem:[#allocation7 + $0x30] sm:$0xf]  ;;  %v2715_v16 = vld [vmem:[#allocation7 + $0x40] sm:$0xf0] }
 0x159   :  { %1651 = vmatpush.bf16.msrb.mxu0 %v2535_v19  ;;  %v2731_v19 = vld [vmem:[#allocation7 + $0x180] sm:$0xf0] }
 0x1d4   :  { %v1352_v31 = vpop.f32.mrf.mxu0  ;;  %v1365_v45 = vpop.f32.mrf.mxu1 }
 0x1d5   :  { %v3143_v20 = vadd.f32 %v1365_v45, %v1352_v31  ;;  %v2738_v31 = vld [vmem:[#allocation7 + $0x214] sm:$0xf]  ;;  %v2596_v45 = vld [vmem:[#allocation7 + $0x224] sm:$0xf0] }
 0x1d6   :  { %v2599_v4 = vor.u32 %v2738_v31, %v2596_v45  ;;  %v2714_v31 = vld [vmem:[#allocation7 + $0x34] sm:$0xf] }
 0x1d7   :  { %v1379_v47 = vrot.slane %v3143_v20, 4  ;;  %v1388_v1 = vmul.f32 %v3143_v20, %v3143_v20 }
 0x1d8   :  { %1664 = vmatpush.bf16.msrb.mxu1 %v2599_v4  ;;  %v2500_v4 = vld [vmem:[#allocation7 + $0x44] sm:$0xf0] }
 0x1d9   :  { %v1380_v24 = vadd.f32 %v1379_v47, %v3143_v20  ;;  %v1395_v25 = vrot.slane %v1388_v1, 4  ;;  %v1326_v26 = vpop.f32.mrf.mxu2  ;;  %v1339_v30 = vpop.f32.mrf.mxu3 }
 0x1da   :  { %v3149_v35 = vadd.f32 %v1339_v30, %v1326_v26  ;;  %v2720_v26 = vld [vmem:[#allocation7 + $0xac] sm:$0xf] }
 0x1db   :  { %v1381_v37 = vrot.slane %v1380_v24, 2  ;;  %v1396_v38 = vadd.f32 %v1395_v25, %v1388_v1  ;;  %v2737_v25 = vld [vmem:[#allocation7 + $0x1f8] sm:$0xf0]  ;;  %v2527_v39 = vor.u32 %v2720_v26, %v2524_v34  ;;  %v2554_v26 = vld [vmem:[#allocation7 + $0x148] sm:$0xf] }
 0x1dc   :  { %v1373_v42 = vrot.slane %v3149_v35, 4  ;;  %v1387_v43 = vmul.f32 %v3149_v35, %v3149_v35  ;;  %v1354_v44 = vpop.f32.mrf.mxu0  ;;  %v1367_v46 = vpop.f32.mrf.mxu1  ;;  %v2587_v33 = vor.u32 %v2737_v25, %v2586_v22  ;;  %1665 = vmatpush.bf16.msrb.mxu1 %v2591_v40  ;;  %v2564_v22 = vld [vmem:[#allocation7 + $0x184] sm:$0xf0] }
 0x1dd   :  { %v1382_v51 = vadd.f32 %v1381_v37, %v1380_v24  ;;  %v1397_v52 = vrot.slane %v1396_v38, 2  ;;  %v2523_v24 = vor.u32 %v2721_v5, %v2522_v21  ;;  %v2578_v44 = vld [vmem:[#allocation7 + $0x1c0] sm:$0xf]  ;;  %1652 = vmatpush.bf16.msrb.mxu0 %v2527_v39  ;;  %v2730_v21 = vld [vmem:[#allocation7 + $0x174] sm:$0xf]  ;;  %v2503_v5 = vor.u32 %v2714_v31, %v2500_v4 }
 0x1de   :  { %v1374_v58 = vadd.f32 %v1373_v42, %v3149_v35  ;;  %v1389_v59 = vrot.slane %v1387_v43, 4  ;;  %1639 = vmatpush.bf16.msra.mxu3 %v2587_v33  ;;  %v2514_v42 = vld [vmem:[#allocation7 + $0x80] sm:$0xf]  ;;  %v2579_v55 = vor.u32 %v2735_v50, %v2578_v44 }
 0x1df   :  { %v1383_v63 = vrot.slane %v1382_v51, 1  ;;  %v1398_v29 = vadd.f32 %v1397_v52, %v1396_v38  ;;  %1626 = vmatpush.bf16.msra.mxu2 %v2523_v24  ;;  %v2516_v52 = vld [vmem:[#allocation7 + $0x94] sm:$0xf0]  ;;  %v2567_v24 = vor.u32 %v2730_v21, %v2564_v22 }
 0x1e0   :  { %v1375_v6 = vrot.slane %v1374_v58, 2  ;;  %v1390_v7 = vadd.f32 %v1389_v59, %v1387_v43  ;;  %v2719_v43 = vld [vmem:[#allocation7 + $0x90] sm:$0xf0]  ;;  %v2580_v59 = vld [vmem:[#allocation7 + $0x1d4] sm:$0xf0] }
 0x1e1   :  { %v1384_v10 = vadd.f32 %v1383_v63, %v1382_v51  ;;  %v1399_v11 = vrot.slane %v1398_v29, 1  ;;  %v1328_v12 = vpop.f32.mrf.mxu2  ;;  %v1341_v2 = vpop.f32.mrf.mxu3  ;;  %v2515_v49 = vor.u32 %v2719_v43, %v2514_v42  ;;  %v2718_v51 = vld [vmem:[#allocation7 + $0x84] sm:$0xf] }
 0x1e2   :  { %v1376_v17 = vadd.f32 %v1375_v6, %v1374_v58  ;;  %v1391_v18 = vrot.slane %v1390_v7, 2  ;;  %v2519_v56 = vor.u32 %v2718_v51, %v2516_v52  ;;  %v2734_v58 = vld [vmem:[#allocation7 + $0x1c4] sm:$0xf]  ;;  %1640 = vmatpush.bf16.msra.mxu3 %v2579_v55  ;;  %v2570_v6 = vld [vmem:[#allocation7 + $0x198] sm:$0xf]  ;;  %v2511_v2 = vor.u32 %v2716_v8, %v2508_v9 }
 0x1e3   :  { %v3156_v47 = vmul.f32 %v1384_v10, %v3105_v28  ;;  %v1400_v1 = vadd.f32 %v1399_v11, %v1398_v29  ;;  %1627 = vmatpush.bf16.msra.mxu2 %v2515_v49  ;;  %v2583_v62 = vor.u32 %v2734_v58, %v2580_v59  ;;  %v2506_v29 = vld [vmem:[#allocation7 + $0x58] sm:$0xf]  ;;  %v2732_v10 = vld [vmem:[#allocation7 + $0x19c] sm:$0xf]  ;;  %v2572_v11 = vld [vmem:[#allocation7 + $0x1ac] sm:$0xf0] }
 0x1e4   :  { %v1377_v23 = vrot.slane %v1376_v17, 1  ;;  %v1392_v54 = vadd.f32 %v1391_v18, %v1390_v7  ;;  %1653 = vmatpush.bf16.msrb.mxu0 %v2519_v56  ;;  %v2507_v3 = vor.u32 %v2717_v0, %v2506_v29  ;;  %v2733_v7 = vld [vmem:[#allocation7 + $0x1a8] sm:$0xf0]  ;;  %v2575_v14 = vor.u32 %v2732_v10, %v2572_v11  ;;  %v2562_v18 = vld [vmem:[#allocation7 + $0x170] sm:$0xf] }
 0x1e5   :  { %v1402_v30 = vmul.f32 %v1400_v1, %v3105_v28  ;;  %v1404_v13 = vmul.f32 %v3156_v47, %v3156_v47  ;;  %1666 = vmatpush.bf16.msrb.mxu1 %v2583_v62  ;;  %v2571_v57 = vor.u32 %v2733_v7, %v2570_v6  ;;  %v2563_v1 = vor.u32 %v2731_v19, %v2562_v18  ;;  %v1370_v56 = vld [vmem:[#allocation8 + $0x2] ss:$8 sm:$0x3]  ;;  %v2751_v19 = vld [vmem:[#allocation7 + $0x138] sm:$0xf0] }
 0x1e6   :  { %v1378_v37 = vadd.f32 %v1377_v23, %v1376_v17  ;;  %v1393_v38 = vrot.slane %v1392_v54, 1  ;;  %v2499_v17 = vor.u32 %v2715_v16, %v2498_v15  ;;  %v2490_v23 = vld [vmem:[#allocation7 + $0x8] sm:$0xf] }
 0x1e7   :  { %v1406_v41 = vsub.f32 %v1402_v30, %v1404_v13  ;;  %1628 = vmatpush.bf16.msra.mxu2 %v2507_v3  ;;  %1641 = vmatpush.bf16.msra.mxu3 %v2571_v57  ;;  %v2729_v30 = vld [vmem:[#allocation7 + $0x158] sm:$0xf0]  ;;  %v2712_v13 = vld [vmem:[#allocation7 + $0xc] sm:$0xf]  ;;  %v2646_v18 = vld [vmem:[#allocation7 + $0x128] sm:$0xf] }
 0x1e8   :  { %v3162_v46 = vmul.f32 %v1378_v37, %v3105_v28  ;;  %v1394_v48 = vadd.f32 %v1393_v38, %v1392_v54  ;;  %1654 = vmatpush.bf16.msrb.mxu0 %v2511_v2  ;;  %v2713_v54 = vld [vmem:[#allocation7 + $0x18] sm:$0xf0]  ;;  %v2555_v34 = vor.u32 %v2729_v30, %v2554_v26  ;;  %v2556_v37 = vld [vmem:[#allocation7 + $0x15c] sm:$0xf0]  ;;  %v2495_v39 = vor.u32 %v2712_v13, %v2492_v27  ;;  %v2750_v30 = vld [vmem:[#allocation7 + $0x110] sm:$0xf0] }
 0x1e9   :  { %v1408_v53 = vmax.f32 %v1406_v41, 0.0  ;;  %1667 = vmatpush.bf16.msrb.mxu1 %v2575_v14  ;;  %v2491_v25 = vor.u32 %v2713_v54, %v2490_v23  ;;  %v2559_v40 = vor.u32 %v2728_v36, %v2556_v37  ;;  %v1372_v3 = vld [vmem:[#allocation8 + $0x3] ss:$8 sm:$0x3]  ;;  %v2647_v31 = vor.u32 %v2751_v19, %v2646_v18 }
 0x1ea   :  { %v1401_v60 = vmul.f32 %v1394_v48, %v3105_v28  ;;  %v1403_v61 = vmul.f32 %v3162_v46, %v3162_v46  ;;  %v2642_v26 = vld [vmem:[#allocation7 + $0x100] sm:$0xf] }
 0x1eb   :  { %v3167_v63 = vadd.f32 1e-05, %v1408_v53  ;;  %1629 = vmatpush.bf16.msra.mxu2 %v2499_v17  ;;  %1642 = vmatpush.bf16.msra.mxu3 %v2563_v1  ;;  %v2759_v1 = vld [vmem:[#allocation7 + $0x278] sm:$0xf0]  ;;  %v2643_v36 = vor.u32 %v2750_v30, %v2642_v26  ;;  %v2674_v37 = vld [vmem:[#allocation7 + $0x240] sm:$0xf] }
 0x1ec   :  { %v1405_v32 = vsub.f32 %v1401_v60, %v1403_v61  ;;  %1655 = vmatpush.bf16.msrb.mxu0 %v2503_v5  ;;  %v2658_v26 = vld [vmem:[#allocation7 + $0x1a0] sm:$0xf]  ;;  %v2754_v30 = vld [vmem:[#allocation7 + $0x1b0] sm:$0xf0] }
 0x1ed   :  { %2888 = vrsqrt.f32 %v3167_v63  ;;  %1668 = vmatpush.bf16.msrb.mxu1 %v2567_v24  ;;  %vm1427_vm9 = vweird.f32 %v3167_v63 }
 0x1ee   :  { %v1407_v12 = vmax.f32 %v1405_v32, 0.0 }
 0x1ef   :  { %1630 = vmatpush.bf16.msra.mxu2 %v2491_v25  ;;  %1643 = vmatpush.bf16.msra.mxu3 %v2555_v34 }
 0x1f0   :  { %v1409_v45 = vadd.f32 1e-05, %v1407_v12  ;;  %1656 = vmatpush.bf16.msrb.mxu0 %v2495_v39 }
 0x1f1   :  { %1669 = vmatpush.bf16.msrb.mxu1 %v2559_v40 }
 0x1f2   :  { %2890 = vrsqrt.f32 %v1409_v45  ;;  %vm1417_vm12 = vweird.f32 %v1409_v45 }
 0x1f3   :  { %v2889_v33 = vpop.eup %2888  ;;  %1866 = vmatpush.bf16.msrb.mxu2 %v2647_v31  ;;  %v2755_v31 = vld [vmem:[#allocation7 + $0x1d8] sm:$0xf0] }
 0x1f4   :  { %v1422_v38 = vmul.f32 %v2889_v33, %v3167_v63  ;;  %vm1428_vm8 = vweird.f32 %v2889_v33 }
 0x1f5   :  { %vm1429_vm10 = vmor %vm1427_vm9, %vm1428_vm8 }
 0x1f6   :  { %v1423_v41 = vmul.f32 %v2889_v33, %v1422_v38  ;;  %v2758_v38 = vld [vmem:[#allocation7 + $0x250] sm:$0xf0] }
 0x1f7   :  { %1867 = vmatpush.bf16.msrb.mxu2 %v2643_v36  ;;  %v2753_v36 = vld [vmem:[#allocation7 + $0x188] sm:$0xf0] }
 0x1f8   :  { %v2891_v42 = vpop.eup %2890  ;;  %v1424_v43 = vmul.f32 0.5, %v1423_v41  ;;  %v2675_v41 = vor.u32 %v2758_v38, %v2674_v37 }
 0x1f9   :  { %v1412_v44 = vmul.f32 %v2891_v42, %v1409_v45  ;;  %vm1418_vm11 = vweird.f32 %v2891_v42  ;;  %v2678_v45 = vld [vmem:[#allocation7 + $0x268] sm:$0xf] }
 0x1fa   :  { %v1425_v48 = vsub.f32 1.5, %v1424_v43  ;;  %vm1419_vm13 = vmor %vm1417_vm12, %vm1418_vm11  ;;  %v2679_v23 = vor.u32 %v2759_v1, %v2678_v45 }
 0x1fb   :  { %v1413_v49 = vmul.f32 %v2891_v42, %v1412_v44 }
 0x1fc   :  { %v1426_v50 = vmul.f32 %v2889_v33, %v1425_v48  ;;  %1879 = vmatpush.bf16.msrb.mxu3 %v2679_v23  ;;  %v2746_v23 = vld [vmem:[#allocation7 + $0x70] sm:$0xf0] }
 0x1fd   :  { %v1414_v51 = vmul.f32 0.5, %v1413_v49  ;;  %v2638_v49 = vld [vmem:[#allocation7 + $0xd8] sm:$0xf] }
 0x1fe   :  { %v1430_v53 = vsel %vm1429_vm10, %v2889_v33, %v1426_v50  ;;  %v2749_v50 = vld [vmem:[#allocation7 + $0xe8] sm:$0xf0] }
 0x1ff   :  { %v1415_v52 = vsub.f32 1.5, %v1414_v51  ;;  %v1433_v58 = vrot.slane %v1430_v53, 7  ;;  %v2639_v53 = vor.u32 %v2749_v50, %v2638_v49 }
 0x200   :  { %1880 = vmatpush.bf16.msrb.mxu3 %v2675_v41 }
 0x201   :  { %v1416_v55 = vmul.f32 %v2891_v42, %v1415_v52  ;;  %1868 = vmatpush.bf16.msrb.mxu2 %v2639_v53 }
 0x203   :  { %v1420_v59 = vsel %vm1419_vm13, %v2891_v42, %v1416_v55  ;;  %v2670_v55 = vld [vmem:[#allocation7 + $0x218] sm:$0xf] }
 0x204   :  { %v1434_v60 = vsel %vm1127_vm6, %v1420_v59, %v1433_v58 }
 0x205   :  { %v1436_v61 = vmul.f32 %v1434_v60, %v1370_v56  ;;  %v2757_v56 = vld [vmem:[#allocation7 + $0x228] sm:$0xf0] }
 0x207   :  { %v1438_v62 = vperm.slane %v1436_v61, 0  ;;  %v1439_v29 = vperm.slane %v1436_v61, 1 }
 0x209   :  { %v1443_v0 = vmul.f32 %v1439_v29, %v3156_v47  ;;  %v1442_v32 = vmul.f32 %v1438_v62, %v3162_v46  ;;  %v1450_v8 = vmul.f32 %v1438_v62, %v3149_v35  ;;  %v1451_v9 = vmul.f32 %v1439_v29, %v3143_v20 }
 0x20a   :  { %v2671_v62 = vor.u32 %v2757_v56, %v2670_v55 }
 0x20b   :  { %v1446_v63 = vrot.slane %v1443_v0, 7 }
 0x20c   :  { %1881 = vmatpush.bf16.msrb.mxu3 %v2671_v62 }
 0x20d   :  { %v1447_v6 = vsel %vm1127_vm6, %v1442_v32, %v1446_v63 }
 0x20e   :  { %v1449_v7 = vsub.f32 %v1372_v3, %v1447_v6  ;;  %v2634_v3 = vld [vmem:[#allocation7 + $0xb0] sm:$0xf]  ;;  %v2748_v6 = vld [vmem:[#allocation7 + $0xc0] sm:$0xf0] }
 0x210   :  { %v1453_v57 = vperm.slane %v1449_v7, 0  ;;  %v1454_v10 = vperm.slane %v1449_v7, 1  ;;  %v2666_v7 = vld [vmem:[#allocation7 + $0x1f0] sm:$0xf] }
 0x212   :  { %v1457_v11 = vadd.f32 %v1453_v57, %v1450_v8  ;;  %v1458_v12 = vadd.f32 %v1454_v10, %v1451_v9  ;;  %v2635_v9 = vor.u32 %v2748_v6, %v2634_v3  ;;  %v2756_v10 = vld [vmem:[#allocation7 + $0x200] sm:$0xf0] }
 0x214   :  { %v1459_v2 = vmax.f32 %v1457_v11, 0.0  ;;  %v1460_v14 = vmax.f32 %v1458_v12, 0.0  ;;  %1869 = vmatpush.bf16.msrb.mxu2 %v2635_v9 }
 0x216   :  { %v1461_v15 = vpack.c.bf16 %v1459_v2, %v1459_v2  ;;  %v1462_v16 = vpack.c.bf16 %v1460_v14, %v1460_v14  ;;  %v2667_v2 = vor.u32 %v2756_v10, %v2666_v7 }
 0x218   :  { %1631 = vmatmul.bf16.vlgmr.msra.gmra.mxu2 %v1461_v15  ;;  %1644 = vmatmul.bf16.vlgmr.msra.gmra.mxu3 %v1462_v16 }
 0x219   :  { %1657 = vmatmul.bf16.vlgmr.msrb.gmra.mxu0 %v1461_v15  ;;  %1670 = vmatmul.bf16.vlgmr.msrb.gmra.mxu1 %v1462_v16 }
 0x21a   :  { %1882 = vmatpush.bf16.msrb.mxu3 %v2667_v2 }
 0x296   :  { %v1658_v47 = vpop.f32.mrf.mxu0  ;;  %v1671_v46 = vpop.f32.mrf.mxu1 }
 0x297   :  { %v3178_v17 = vadd.f32 %v1671_v46, %v1658_v47  ;;  %v2630_v47 = vld [vmem:[#allocation7 + $0x88] sm:$0xf]  ;;  %v2747_v46 = vld [vmem:[#allocation7 + $0x98] sm:$0xf0] }
 0x298   :  { %v2631_v19 = vor.u32 %v2747_v46, %v2630_v47 }
 0x299   :  { %v1685_v35 = vrot.slane %v3178_v17, 4  ;;  %v1694_v20 = vmul.f32 %v3178_v17, %v3178_v17 }
 0x29a   :  { %1870 = vmatpush.bf16.msrb.mxu2 %v2631_v19 }
 0x29b   :  { %v1686_v4 = vadd.f32 %v1685_v35, %v3178_v17  ;;  %v1701_v21 = vrot.slane %v1694_v20, 4  ;;  %v1632_v5 = vpop.f32.mrf.mxu2  ;;  %v1645_v22 = vpop.f32.mrf.mxu3  ;;  %v2662_v35 = vld [vmem:[#allocation7 + $0x1c8] sm:$0xf] }
 0x29c   :  { %v3184_v54 = vadd.f32 %v1645_v22, %v1632_v5  ;;  %v2663_v1 = vor.u32 %v2755_v31, %v2662_v35  ;;  %v2626_v22 = vld [vmem:[#allocation7 + $0x60] sm:$0xf] }
 0x29d   :  { %v1687_v24 = vrot.slane %v1686_v4, 2  ;;  %v1702_v25 = vadd.f32 %v1701_v21, %v1694_v20 }
 0x29e   :  { %v1679_v13 = vrot.slane %v3184_v54, 4  ;;  %v1693_v33 = vmul.f32 %v3184_v54, %v3184_v54  ;;  %v1660_v34 = vpop.f32.mrf.mxu0  ;;  %v1673_v27 = vpop.f32.mrf.mxu1  ;;  %1883 = vmatpush.bf16.msrb.mxu3 %v2663_v1 }
 0x29f   :  { %v1688_v39 = vadd.f32 %v1687_v24, %v1686_v4  ;;  %v1703_v40 = vrot.slane %v1702_v25, 2  ;;  %v2745_v34 = vld [vmem:[#allocation7 + $0x48] sm:$0xf0]  ;;  %v2654_v27 = vld [vmem:[#allocation7 + $0x178] sm:$0xf] }
 0x2a0   :  { %v1680_v42 = vadd.f32 %v1679_v13, %v3184_v54  ;;  %v1695_v43 = vrot.slane %v1693_v33, 4  ;;  %v2622_v13 = vld [vmem:[#allocation7 + $0x38] sm:$0xf]  ;;  %v2655_v38 = vor.u32 %v2753_v36, %v2654_v27 }
 0x2a1   :  { %v1689_v44 = vrot.slane %v1688_v39, 1  ;;  %v1704_v48 = vadd.f32 %v1703_v40, %v1702_v25  ;;  %v2627_v25 = vor.u32 %v2746_v23, %v2626_v22  ;;  %v2744_v40 = vld [vmem:[#allocation7 + $0x20] sm:$0xf0] }
 0x2a2   :  { %v1681_v51 = vrot.slane %v1680_v42, 2  ;;  %v1696_v52 = vadd.f32 %v1695_v43, %v1693_v33  ;;  %v2659_v33 = vor.u32 %v2754_v30, %v2658_v26  ;;  %v2752_v43 = vld [vmem:[#allocation7 + $0x160] sm:$0xf0] }
 0x2a3   :  { %v1690_v58 = vadd.f32 %v1689_v44, %v1688_v39  ;;  %v1705_v59 = vrot.slane %v1704_v48, 1  ;;  %v1634_v60 = vpop.f32.mrf.mxu2  ;;  %v1647_v61 = vpop.f32.mrf.mxu3  ;;  %1871 = vmatpush.bf16.msrb.mxu2 %v2627_v25  ;;  %v2618_v39 = vld [vmem:[#allocation7 + $0x10] sm:$0xf] }
 0x2a4   :  { %v1682_v29 = vadd.f32 %v1681_v51, %v1680_v42  ;;  %v1697_v0 = vrot.slane %v1696_v52, 2  ;;  %1884 = vmatpush.bf16.msrb.mxu3 %v2659_v33  ;;  %v2650_v42 = vld [vmem:[#allocation7 + $0x150] sm:$0xf]  ;;  %v2619_v44 = vor.u32 %v2744_v40, %v2618_v39 }
 0x2a5   :  { %v3191_v32 = vmul.f32 %v1690_v58, %v3105_v28  ;;  %v1706_v63 = vadd.f32 %v1705_v59, %v1704_v48  ;;  %v2651_v49 = vor.u32 %v2752_v43, %v2650_v42 }
 0x2a6   :  { %v1683_v8 = vrot.slane %v1682_v29, 1  ;;  %v1698_v57 = vadd.f32 %v1697_v0, %v1696_v52  ;;  %v1676_v0 = vld [vmem:[#allocation8 + $0x4] ss:$8 sm:$0x3] }
 0x2a7   :  { %v1708_v11 = vmul.f32 %v1706_v63, %v3105_v28  ;;  %v1710_v12 = vmul.f32 %v3191_v32, %v3191_v32 }
 0x2a8   :  { %v1684_v14 = vadd.f32 %v1683_v8, %v1682_v29  ;;  %v1699_v15 = vrot.slane %v1698_v57, 1  ;;  %1885 = vmatpush.bf16.msrb.mxu3 %v2655_v38 }
 0x2a9   :  { %v1712_v16 = vsub.f32 %v1708_v11, %v1710_v12  ;;  %v1678_v12 = vld [vmem:[#allocation8 + $0x5] ss:$8 sm:$0x3] }
 0x2aa   :  { %v3197_v20 = vmul.f32 %v1684_v14, %v3105_v28  ;;  %v1700_v18 = vadd.f32 %v1699_v15, %v1698_v57 }
 0x2ab   :  { %v1714_v45 = vmax.f32 %v1712_v16, 0.0 }
 0x2ac   :  { %v1707_v4 = vmul.f32 %v1700_v18, %v3105_v28  ;;  %v1709_v21 = vmul.f32 %v3197_v20, %v3197_v20  ;;  %v2623_v28 = vor.u32 %v2745_v34, %v2622_v13  ;;  %1886 = vmatpush.bf16.msrb.mxu3 %v2651_v49 }
 0x2ad   :  { %v1716_v5 = vadd.f32 1e-05, %v1714_v45 }
 0x2ae   :  { %v1711_v24 = vsub.f32 %v1707_v4, %v1709_v21  ;;  %1872 = vmatpush.bf16.msrb.mxu2 %v2623_v28 }
 0x2af   :  { %2892 = vrsqrt.f32 %v1716_v5  ;;  %vm1733_vm15 = vweird.f32 %v1716_v5 }
 0x2b0   :  { %v1713_v37 = vmax.f32 %v1711_v24, 0.0 }
 0x2b2   :  { %v1715_v41 = vadd.f32 1e-05, %v1713_v37  ;;  %1873 = vmatpush.bf16.msrb.mxu2 %v2619_v44 }
 0x2b4   :  { %2894 = vrsqrt.f32 %v1715_v41  ;;  %vm1723_vm2 = vweird.f32 %v1715_v41 }
 0x2b5   :  { %v2893_v48 = vpop.eup %2892 }
 0x2b6   :  { %v1728_v50 = vmul.f32 %v2893_v48, %v1716_v5  ;;  %vm1734_vm14 = vweird.f32 %v2893_v48 }
 0x2b7   :  { %vm1735_vm0 = vmor %vm1733_vm15, %vm1734_vm14 }
 0x2b8   :  { %v1729_v51 = vmul.f32 %v2893_v48, %v1728_v50 }
 0x2ba   :  { %v2895_v52 = vpop.eup %2894  ;;  %v1730_v53 = vmul.f32 0.5, %v1729_v51 }
 0x2bb   :  { %v1718_v55 = vmul.f32 %v2895_v52, %v1715_v41  ;;  %vm1724_vm1 = vweird.f32 %v2895_v52 }
 0x2bc   :  { %v1731_v56 = vsub.f32 1.5, %v1730_v53  ;;  %vm1725_vm3 = vmor %vm1723_vm2, %vm1724_vm1 }
 0x2bd   :  { %v1719_v58 = vmul.f32 %v2895_v52, %v1718_v55 }
 0x2be   :  { %v1732_v59 = vmul.f32 %v2893_v48, %v1731_v56 }
 0x2bf   :  { %v1720_v60 = vmul.f32 0.5, %v1719_v58 }
 0x2c0   :  { %v1736_v62 = vsel %vm1735_vm0, %v2893_v48, %v1732_v59 }
 0x2c1   :  { %v1721_v61 = vsub.f32 1.5, %v1720_v60  ;;  %v1739_v63 = vrot.slane %v1736_v62, 7 }
 0x2c3   :  { %v1722_v29 = vmul.f32 %v2895_v52, %v1721_v61 }
 0x2c5   :  { %v1726_v3 = vsel %vm1725_vm3, %v2895_v52, %v1722_v29 }
 0x2c6   :  { %v1740_v6 = vsel %vm1127_vm6, %v1726_v3, %v1739_v63 }
 0x2c7   :  { %v1742_v7 = vmul.f32 %v1740_v6, %v1676_v0 }
 0x2c9   :  { %v1744_v8 = vperm.slane %v1742_v7, 0  ;;  %v1745_v57 = vperm.slane %v1742_v7, 1 }
 0x2cb   :  { %v1749_v9 = vmul.f32 %v1745_v57, %v3191_v32  ;;  %v1748_v10 = vmul.f32 %v1744_v8, %v3197_v20  ;;  %v1756_v15 = vmul.f32 %v1744_v8, %v3184_v54  ;;  %v1757_v47 = vmul.f32 %v1745_v57, %v3178_v17  ;;  %v1769_v32 = vld [vmem:[#allocation8 + $0x6] ss:$0 sm:$0xff] }
 0x2cd   :  { %v1752_v11 = vrot.slane %v1749_v9, 7 }
 0x2cf   :  { %v1753_v2 = vsel %vm1127_vm6, %v1748_v10, %v1752_v11 }
 0x2d0   :  { %v1755_v14 = vsub.f32 %v1678_v12, %v1753_v2 }
 0x2d2   :  { %v1759_v16 = vperm.slane %v1755_v14, 0  ;;  %v1760_v46 = vperm.slane %v1755_v14, 1 }
 0x2d4   :  { %v1763_v35 = vadd.f32 %v1759_v16, %v1756_v15  ;;  %v1764_v18 = vadd.f32 %v1760_v46, %v1757_v47 }
 0x2d6   :  { %v1765_v19 = vmax.f32 %v1763_v35, 0.0  ;;  %v1766_v31 = vmax.f32 %v1764_v18, 0.0 }
 0x2d8   :  { %v1767_v45 = vpack.c.bf16 %v1765_v19, %v1765_v19  ;;  %v1768_v1 = vpack.c.bf16 %v1766_v31, %v1766_v31 }
 0x2da   :  { %1874 = vmatmul.bf16.vlgmr.msrb.gmra.mxu2 %v1767_v45  ;;  %1887 = vmatmul.bf16.vlgmr.msrb.gmra.mxu3 %v1768_v1 }
 0x35d   :  { %v1875_v20 = vpop.f32.mrf.mxu2  ;;  %v1888_v4 = vpop.f32.mrf.mxu3 }
 0x35e   :  { %v1876_v54 = vadd.f32 %v1875_v20, %v1769_v32 }
 0x360   :  { %v1889_v17 = vadd.f32 %v1888_v4, %v1876_v54 }
 0x362   :  { %1892 = vst [vmem:[#allocation10] sm:$0xff] %v1889_v17 }
 0x363   :  { %1903 = dma.vmem_to_hbm [thread:$0]  %s1899_s3, 128, %s1901_s13, [#allocation4]  }
 0x365   :  { %v1877_v21 = vpop.f32.mrf.mxu2  ;;  %v1890_v5 = vpop.f32.mrf.mxu3 }
 0x366   :  { %3022 = dma.done.wait [#allocation4], 128  }
 0x367   :  { %3023 = vsyncadd [#allocation4], 4294967168 }
 0x368   :  { %1908 = vsyncpa [#allocation3], 1 }
 0x369   :  { %1909 = vsyncpa [#allocation6], 1 }
 0x36a   :  { %1910 = vsyncpa [#allocation9], 1 }
 0x36b   :  { %1911 = vsyncpa [#allocation4], 1 }

</bundles_post_ra>
